<compile_context>
chip_gen: v7x
topology: tpu7x:2x2x1
jax: 0.10.0
libtpu: 0.0.40
codegen_flags: <defaults>
</compile_context>

<pallas_src>
import functools

import jax
import jax.numpy as jnp
from jax.experimental import pallas as pl
from jax.experimental.pallas import tpu as pltpu


_MM_DT = jnp.bfloat16   # MXU operand dtype; accumulation is always f32.


def _mm(a, b):
    """Standard-orientation matmul: bf16 operands, f32 accumulation."""
    return jnp.dot(a.astype(_MM_DT), b.astype(_MM_DT),
                   preferred_element_type=jnp.float32)


# ----------------------------------------------------------------------------
# Fused per-graph kernel (one grid step == one graph)
# ----------------------------------------------------------------------------
def _fused_kernel(*refs, n_mlp, k, A, C):
    # ---- unpack refs: inputs..., out_ref ----
    h_ref, mask_ref = refs[0], refs[1]
    pos = 2
    mlp = []
    for _ in range(n_mlp):
        mlp.append((refs[pos], refs[pos + 1]))
        pos += 2
    (att_w_ref, att_a_ref, pool_w_ref, pool_b_ref,
     conv_w_ref, conv_b_ref, fc1_w_ref, fc1_b_ref,
     fc2_w_ref, fc2_b_ref, out_ref) = refs[pos:pos + 11]

    # ---- node MLP (activation = ReLU) ----
    x = h_ref[0]                                        # (N, Din) f32
    for (w_ref, b_ref) in mlp:
        x = jnp.maximum(_mm(x, w_ref[...]) + b_ref[...], 0.0)
    feat = x                                            # (N, D)
    mask = mask_ref[0]                                  # (N, N) additive 0 / -1e30 (f32)

    readouts = []
    for i in range(k):
        # ---- GIAttPNP: GAT-style attention propagation with residual ----
        z = _mm(feat, att_w_ref[i])                     # (N, D)
        a_i = att_a_ref[i]                              # (2, D): row0=a_src, row1=a_dst
        es = jax.lax.dot_general(z, a_i[0:1, :], (((1,), (1,)), ((), ())),
                                 preferred_element_type=jnp.float32)      # (N, 1)
        ed = jax.lax.dot_general(a_i[1:2, :], z, (((1,), (1,)), ((), ())),
                                 preferred_element_type=jnp.float32)      # (1, N)
        e = es + ed                                                       # (N, N) f32
        e = jnp.where(e >= 0.0, e, 0.2 * e)             # LeakyReLU(0.2)
        e = e + mask                                    # mask non-edges (stay in f32!)
        e = e - jnp.max(e, axis=-1, keepdims=True)      # lane-axis reduce
        p = jnp.exp(e)
        alpha = p * pl.reciprocal(jnp.sum(p, axis=-1, keepdims=True), approx=True)
        feat = _mm(alpha, z) + feat                     # neighbor aggregate + residual

        # ---- soft attention pooling readout at this depth ----
        scores = _mm(feat, pool_w_ref[i]) + pool_b_ref[i]                 # (N, A)
        scores = scores - jnp.max(scores, axis=0, keepdims=True)
        pe = jnp.exp(scores)
        w_nodes = pe * pl.reciprocal(jnp.sum(pe, axis=0, keepdims=True), approx=True)
        pooled = jax.lax.dot_general(w_nodes, feat, (((0,), (0,)), ((), ())),
                                     preferred_element_type=jnp.float32)  # (A, D)
        readouts.append(pooled)

    merged = jnp.concatenate(readouts, axis=-1)         # (A, k*D)

    # ---- Conv1d(1, C, k*D, stride=k*D) == per-slot matmul; conv[a, c] = out[c, a] ----
    conv = jnp.maximum(_mm(merged, conv_w_ref[...]) + conv_b_ref[...], 0.0)   # (A, C)

    # ---- fc1: PyTorch flattens conv1 (B, C, A) row-major -> fc_in index = c*A + a ----
    fc1 = fc1_b_ref[...]                                # (1, 128)
    for c in range(C):
        w_c = fc1_w_ref[c * A:(c + 1) * A, :]           # (A, 128) static row block
        fc1 = fc1 + jax.lax.dot_general(conv[:, c:c + 1], w_c,
                                        (((0,), (0,)), ((), ())),
                                        preferred_element_type=jnp.float32)
    fc1 = jnp.maximum(fc1, 0.0)

    # TODO(synk): nn.Dropout is identity at inference; training-mode dropout not implemented.
    fc2 = _mm(fc1, fc2_w_ref[...]) + fc2_b_ref[...]     # (1, 2)
    out_ref[0] = jax.nn.sigmoid(fc2)


# ----------------------------------------------------------------------------
# Parameter init (layout already stacked/kernel-friendly)
# ----------------------------------------------------------------------------
def init_params(key, in_feats, n_hidden, k, active_nodes, channel):
    keys = iter(jax.random.split(key, 64))

    def nxt():
        return next(keys)

    D = n_hidden[-1]
    A, C = active_nodes, channel
    params = {}
    dims = [in_feats] + list(n_hidden)
    params["mlp"] = [
        (jax.random.normal(nxt(), (a, b), jnp.float32) * 0.1,
         jax.random.normal(nxt(), (1, b), jnp.float32) * 0.01)
        for a, b in zip(dims[:-1], dims[1:])
    ]
    params["att_w"] = jax.random.normal(nxt(), (k, D, D), jnp.float32) * 0.1
    params["att_a"] = jax.random.normal(nxt(), (k, 2, D), jnp.float32) * 0.1   # [:,0]=src, [:,1]=dst
    params["pool_w"] = jax.random.normal(nxt(), (k, D, A), jnp.float32) * 0.1
    params["pool_b"] = jax.random.normal(nxt(), (k, 1, A), jnp.float32) * 0.01
    # Conv1d(1, C, k*D, stride=k*D) weight stored transposed: (k*D, C)
    params["conv_w"] = jax.random.normal(nxt(), (k * D, C), jnp.float32) * 0.1
    params["conv_b"] = jax.random.normal(nxt(), (1, C), jnp.float32) * 0.01
    params["fc1_w"] = jax.random.normal(nxt(), (C * A, 128), jnp.float32) * 0.1
    params["fc1_b"] = jax.random.normal(nxt(), (1, 128), jnp.float32) * 0.01
    params["fc2_w"] = jax.random.normal(nxt(), (128, 2), jnp.float32) * 0.1
    params["fc2_b"] = jax.random.normal(nxt(), (1, 2), jnp.float32) * 0.01
    return params


# ----------------------------------------------------------------------------
# Forward: single fused pallas_call over grid=(B,)
# ----------------------------------------------------------------------------
def giattpnp_forward(params, h, adj, *, k, active_nodes, channel):
    B, N, Din = h.shape
    A, C = active_nodes, channel
    n_mlp = len(params["mlp"])

    # Additive edge mask (0 for edges, -1e30 otherwise), computed once.
    mask = jnp.where(adj > 0.0, 0.0, -1e30).astype(jnp.float32)

    def full_spec(arr):
        zeros = (0,) * arr.ndim
        return pl.BlockSpec(arr.shape, lambda b: zeros)   # weights: whole array, constant block

    inputs = [h, mask]
    in_specs = [pl.BlockSpec((1, N, Din), lambda b: (b, 0, 0)),
                pl.BlockSpec((1, N, N), lambda b: (b, 0, 0))]
    for (w, bvec) in params["mlp"]:
        inputs += [w, bvec]
        in_specs += [full_spec(w), full_spec(bvec)]
    tail = [params["att_w"], params["att_a"], params["pool_w"], params["pool_b"],
            params["conv_w"], params["conv_b"], params["fc1_w"], params["fc1_b"],
            params["fc2_w"], params["fc2_b"]]
    inputs += tail
    in_specs += [full_spec(t) for t in tail]

    out = pl.pallas_call(
        functools.partial(_fused_kernel, n_mlp=n_mlp, k=k, A=A, C=C),
        out_shape=jax.ShapeDtypeStruct((B, 1, 2), jnp.float32),
        grid=(B,),
        in_specs=in_specs,
        out_specs=pl.BlockSpec((1, 1, 2), lambda b: (b, 0, 0)),
        compiler_params=pltpu.CompilerParams(dimension_semantics=("parallel",)),
    )(*inputs)
    return out.reshape(B, 2)


# ----------------------------------------------------------------------------
# Demo
# ----------------------------------------------------------------------------
if __name__ == "__main__":
    B, N = 2, 12                 # 2 graphs, 12 nodes each
    in_feats = 16
    n_hidden = [32, 32]
    k = 2
    active_nodes = 8
    channel = 4

    key = jax.random.PRNGKey(0)
    kp, kh, ka = jax.random.split(key, 3)

    params = init_params(kp, in_feats, n_hidden, k, active_nodes, channel)

    h = jax.random.normal(kh, (B, N, in_feats), jnp.float32)
    # random symmetric adjacency with self-loops (guards all-masked softmax rows)
    logits = jax.random.uniform(ka, (B, N, N))
    adj = (logits > 0.6).astype(jnp.float32)
    adj = jnp.maximum(adj, jnp.transpose(adj, (0, 2, 1)))
    adj = jnp.maximum(adj, jnp.eye(N, dtype=jnp.float32)[None])

    fwd = jax.jit(functools.partial(giattpnp_forward, k=k,
                                    active_nodes=active_nodes, channel=channel))
    out = fwd(params, h, adj)
    out = jax.block_until_ready(out)
    assert out.shape == (B, 2)
    assert bool(jnp.all(jnp.isfinite(out)))
    print("KERNEL_OK")
</pallas_src>

<mosaic_0001>
module attributes {stable_mosaic.version = 11 : i64} {
  func.func @_fused_kernel(%arg0: i32, %arg1: memref<1x12x16xf32, #tpu.memory_space<vmem>>, %arg2: memref<1x12x12xf32, #tpu.memory_space<vmem>>, %arg3: memref<16x32xf32, #tpu.memory_space<vmem>>, %arg4: memref<1x32xf32, #tpu.memory_space<vmem>>, %arg5: memref<32x32xf32, #tpu.memory_space<vmem>>, %arg6: memref<1x32xf32, #tpu.memory_space<vmem>>, %arg7: memref<2x32x32xf32, #tpu.memory_space<vmem>>, %arg8: memref<2x2x32xf32, #tpu.memory_space<vmem>>, %arg9: memref<2x32x8xf32, #tpu.memory_space<vmem>>, %arg10: memref<2x1x8xf32, #tpu.memory_space<vmem>>, %arg11: memref<64x4xf32, #tpu.memory_space<vmem>>, %arg12: memref<1x4xf32, #tpu.memory_space<vmem>>, %arg13: memref<32x128xf32, #tpu.memory_space<vmem>>, %arg14: memref<1x128xf32, #tpu.memory_space<vmem>>, %arg15: memref<128x2xf32, #tpu.memory_space<vmem>>, %arg16: memref<1x2xf32, #tpu.memory_space<vmem>>, %arg17: memref<1x1x2xf32, #tpu.memory_space<vmem>>) attributes {dimension_semantics = [#tpu.dimension_semantics<parallel>], iteration_bounds = array<i64: 2>, scalar_prefetch = 0 : i64, scratch_operands = 0 : i64, tpu.core_type = #tpu.core_type<tc>, window_params = [{transform_indices = @transform_0, window_bounds = array<i64: 1, 12, 16>}, {transform_indices = @transform_1, window_bounds = array<i64: 1, 12, 12>}, {pipeline_mode = #tpu.pipeline_mode<synchronous>, transform_indices = @transform_2, window_bounds = array<i64: 16, 32>}, {pipeline_mode = #tpu.pipeline_mode<synchronous>, transform_indices = @transform_3, window_bounds = array<i64: 1, 32>}, {pipeline_mode = #tpu.pipeline_mode<synchronous>, transform_indices = @transform_4, window_bounds = array<i64: 32, 32>}, {pipeline_mode = #tpu.pipeline_mode<synchronous>, transform_indices = @transform_5, window_bounds = array<i64: 1, 32>}, {pipeline_mode = #tpu.pipeline_mode<synchronous>, transform_indices = @transform_6, window_bounds = array<i64: 2, 32, 32>}, {pipeline_mode = #tpu.pipeline_mode<synchronous>, transform_indices = @transform_7, window_bounds = array<i64: 2, 2, 32>}, {pipeline_mode = #tpu.pipeline_mode<synchronous>, transform_indices = @transform_8, window_bounds = array<i64: 2, 32, 8>}, {pipeline_mode = #tpu.pipeline_mode<synchronous>, transform_indices = @transform_9, window_bounds = array<i64: 2, 1, 8>}, {pipeline_mode = #tpu.pipeline_mode<synchronous>, transform_indices = @transform_10, window_bounds = array<i64: 64, 4>}, {pipeline_mode = #tpu.pipeline_mode<synchronous>, transform_indices = @transform_11, window_bounds = array<i64: 1, 4>}, {pipeline_mode = #tpu.pipeline_mode<synchronous>, transform_indices = @transform_12, window_bounds = array<i64: 32, 128>}, {pipeline_mode = #tpu.pipeline_mode<synchronous>, transform_indices = @transform_13, window_bounds = array<i64: 1, 128>}, {pipeline_mode = #tpu.pipeline_mode<synchronous>, transform_indices = @transform_14, window_bounds = array<i64: 128, 2>}, {pipeline_mode = #tpu.pipeline_mode<synchronous>, transform_indices = @transform_15, window_bounds = array<i64: 1, 2>}, {transform_indices = @transform_16, window_bounds = array<i64: 1, 1, 2>}]} {
    %c0 = arith.constant 0 : index
    %c0_0 = arith.constant 0 : index
    %c0_1 = arith.constant 0 : index
    %0 = vector.load %arg1[%c0, %c0_0, %c0_1] : memref<1x12x16xf32, #tpu.memory_space<vmem>>, vector<1x12x16xf32>
    %1 = vector.shape_cast %0 : vector<1x12x16xf32> to vector<12x16xf32>
    %c0_2 = arith.constant 0 : index
    %c0_3 = arith.constant 0 : index
    %2 = vector.load %arg3[%c0_2, %c0_3] : memref<16x32xf32, #tpu.memory_space<vmem>>, vector<16x32xf32>
    %3 = arith.truncf %1 : vector<12x16xf32> to vector<12x16xbf16>
    %4 = arith.truncf %2 : vector<16x32xf32> to vector<16x32xbf16>
    %cst = arith.constant dense<0.000000e+00> : vector<12x32xf32>
    %5 = tpu.matmul %3, %4, %cst {dimension_numbers = #tpu.dot_dimension_numbers<[1], [0], [0], [1], [0, 0, 1, 1], [], []>} : vector<12x16xbf16>, vector<16x32xbf16>, vector<12x32xf32> -> vector<12x32xf32>
    %c0_4 = arith.constant 0 : index
    %c0_5 = arith.constant 0 : index
    %6 = vector.load %arg4[%c0_4, %c0_5] : memref<1x32xf32, #tpu.memory_space<vmem>>, vector<1x32xf32>
    %7 = vector.broadcast %6 : vector<1x32xf32> to vector<12x32xf32>
    %8 = arith.addf %5, %7 : vector<12x32xf32>
    %cst_6 = arith.constant 0.000000e+00 : f32
    %9 = vector.broadcast %cst_6 : f32 to vector<12x32xf32>
    %10 = arith.maximumf %8, %9 : vector<12x32xf32>
    %c0_7 = arith.constant 0 : index
    %c0_8 = arith.constant 0 : index
    %11 = vector.load %arg5[%c0_7, %c0_8] : memref<32x32xf32, #tpu.memory_space<vmem>>, vector<32x32xf32>
    %12 = arith.truncf %10 : vector<12x32xf32> to vector<12x32xbf16>
    %13 = arith.truncf %11 : vector<32x32xf32> to vector<32x32xbf16>
    %cst_9 = arith.constant dense<0.000000e+00> : vector<12x32xf32>
    %14 = tpu.matmul %12, %13, %cst_9 {dimension_numbers = #tpu.dot_dimension_numbers<[1], [0], [0], [1], [0, 0, 1, 1], [], []>} : vector<12x32xbf16>, vector<32x32xbf16>, vector<12x32xf32> -> vector<12x32xf32>
    %c0_10 = arith.constant 0 : index
    %c0_11 = arith.constant 0 : index
    %15 = vector.load %arg6[%c0_10, %c0_11] : memref<1x32xf32, #tpu.memory_space<vmem>>, vector<1x32xf32>
    %16 = vector.broadcast %15 : vector<1x32xf32> to vector<12x32xf32>
    %17 = arith.addf %14, %16 : vector<12x32xf32>
    %cst_12 = arith.constant 0.000000e+00 : f32
    %18 = vector.broadcast %cst_12 : f32 to vector<12x32xf32>
    %19 = arith.maximumf %17, %18 : vector<12x32xf32>
    %c0_13 = arith.constant 0 : index
    %c0_14 = arith.constant 0 : index
    %c0_15 = arith.constant 0 : index
    %20 = vector.load %arg2[%c0_13, %c0_14, %c0_15] : memref<1x12x12xf32, #tpu.memory_space<vmem>>, vector<1x12x12xf32>
    %21 = vector.shape_cast %20 : vector<1x12x12xf32> to vector<12x12xf32>
    %c0_16 = arith.constant 0 : index
    %c0_17 = arith.constant 0 : index
    %c0_18 = arith.constant 0 : index
    %22 = vector.load %arg7[%c0_16, %c0_17, %c0_18] : memref<2x32x32xf32, #tpu.memory_space<vmem>>, vector<1x32x32xf32>
    %23 = vector.shape_cast %22 : vector<1x32x32xf32> to vector<32x32xf32>
    %24 = arith.truncf %19 : vector<12x32xf32> to vector<12x32xbf16>
    %25 = arith.truncf %23 : vector<32x32xf32> to vector<32x32xbf16>
    %cst_19 = arith.constant dense<0.000000e+00> : vector<12x32xf32>
    %26 = tpu.matmul %24, %25, %cst_19 {dimension_numbers = #tpu.dot_dimension_numbers<[1], [0], [0], [1], [0, 0, 1, 1], [], []>} : vector<12x32xbf16>, vector<32x32xbf16>, vector<12x32xf32> -> vector<12x32xf32>
    %c0_20 = arith.constant 0 : index
    %c0_21 = arith.constant 0 : index
    %c0_22 = arith.constant 0 : index
    %27 = vector.load %arg8[%c0_20, %c0_21, %c0_22] : memref<2x2x32xf32, #tpu.memory_space<vmem>>, vector<1x2x32xf32>
    %28 = vector.shape_cast %27 : vector<1x2x32xf32> to vector<2x32xf32>
    %29 = vector.extract_strided_slice %28 {offsets = [0, 0], sizes = [1, 32], strides = [1, 1]} : vector<2x32xf32> to vector<1x32xf32>
    %cst_23 = arith.constant dense<0.000000e+00> : vector<12x1xf32>
    %30 = tpu.matmul %26, %29, %cst_23 {dimension_numbers = #tpu.dot_dimension_numbers<[1], [1], [0], [0], [0, 0, 1, 0], [], []>} : vector<12x32xf32>, vector<1x32xf32>, vector<12x1xf32> -> vector<12x1xf32>
    %31 = vector.extract_strided_slice %28 {offsets = [1, 0], sizes = [1, 32], strides = [1, 1]} : vector<2x32xf32> to vector<1x32xf32>
    %cst_24 = arith.constant dense<0.000000e+00> : vector<1x12xf32>
    %32 = tpu.matmul %31, %26, %cst_24 {dimension_numbers = #tpu.dot_dimension_numbers<[1], [1], [0], [0], [0, 0, 1, 0], [], []>} : vector<1x32xf32>, vector<12x32xf32>, vector<1x12xf32> -> vector<1x12xf32>
    %33 = vector.broadcast %30 : vector<12x1xf32> to vector<12x12xf32>
    %34 = vector.broadcast %32 : vector<1x12xf32> to vector<12x12xf32>
    %35 = arith.addf %33, %34 : vector<12x12xf32>
    %cst_25 = arith.constant 0.000000e+00 : f32
    %36 = vector.broadcast %cst_25 : f32 to vector<12x12xf32>
    %37 = arith.cmpf oge, %35, %36 : vector<12x12xf32>
    %cst_26 = arith.constant 2.000000e-01 : f32
    %38 = vector.broadcast %cst_26 : f32 to vector<12x12xf32>
    %39 = arith.mulf %38, %35 : vector<12x12xf32>
    %40 = arith.select %37, %35, %39 : vector<12x12xi1>, vector<12x12xf32>
    %41 = arith.addf %40, %21 : vector<12x12xf32>
    %cst_27 = arith.constant dense<0xFF800000> : vector<12xf32>
    %42 = vector.multi_reduction <maximumf>, %41, %cst_27 [1] : vector<12x12xf32> to vector<12xf32>
    %43 = vector.shape_cast %42 : vector<12xf32> to vector<12x1xf32>
    %44 = vector.broadcast %43 : vector<12x1xf32> to vector<12x12xf32>
    %45 = arith.subf %41, %44 : vector<12x12xf32>
    %46 = math.exp %45 : vector<12x12xf32>
    %cst_28 = arith.constant dense<0.000000e+00> : vector<12xf32>
    %47 = vector.multi_reduction <add>, %46, %cst_28 [1] : vector<12x12xf32> to vector<12xf32>
    %48 = vector.shape_cast %47 : vector<12xf32> to vector<12x1xf32>
    %49 = tpu.reciprocal %48 {approx = true} : vector<12x1xf32> -> vector<12x1xf32>
    %50 = vector.broadcast %49 : vector<12x1xf32> to vector<12x12xf32>
    %51 = arith.mulf %46, %50 : vector<12x12xf32>
    %52 = arith.truncf %51 : vector<12x12xf32> to vector<12x12xbf16>
    %53 = arith.truncf %26 : vector<12x32xf32> to vector<12x32xbf16>
    %cst_29 = arith.constant dense<0.000000e+00> : vector<12x32xf32>
    %54 = tpu.matmul %52, %53, %cst_29 {dimension_numbers = #tpu.dot_dimension_numbers<[1], [0], [0], [1], [0, 0, 1, 1], [], []>} : vector<12x12xbf16>, vector<12x32xbf16>, vector<12x32xf32> -> vector<12x32xf32>
    %55 = arith.addf %54, %19 : vector<12x32xf32>
    %c0_30 = arith.constant 0 : index
    %c0_31 = arith.constant 0 : index
    %c0_32 = arith.constant 0 : index
    %56 = vector.load %arg9[%c0_30, %c0_31, %c0_32] : memref<2x32x8xf32, #tpu.memory_space<vmem>>, vector<1x32x8xf32>
    %57 = vector.shape_cast %56 : vector<1x32x8xf32> to vector<32x8xf32>
    %58 = arith.truncf %55 : vector<12x32xf32> to vector<12x32xbf16>
    %59 = arith.truncf %57 : vector<32x8xf32> to vector<32x8xbf16>
    %cst_33 = arith.constant dense<0.000000e+00> : vector<12x8xf32>
    %60 = tpu.matmul %58, %59, %cst_33 {dimension_numbers = #tpu.dot_dimension_numbers<[1], [0], [0], [1], [0, 0, 1, 1], [], []>} : vector<12x32xbf16>, vector<32x8xbf16>, vector<12x8xf32> -> vector<12x8xf32>
    %c0_34 = arith.constant 0 : index
    %c0_35 = arith.constant 0 : index
    %c0_36 = arith.constant 0 : index
    %61 = vector.load %arg10[%c0_34, %c0_35, %c0_36] : memref<2x1x8xf32, #tpu.memory_space<vmem>>, vector<1x1x8xf32>
    %62 = vector.shape_cast %61 : vector<1x1x8xf32> to vector<1x8xf32>
    %63 = vector.broadcast %62 : vector<1x8xf32> to vector<12x8xf32>
    %64 = arith.addf %60, %63 : vector<12x8xf32>
    %cst_37 = arith.constant dense<0xFF800000> : vector<8xf32>
    %65 = vector.multi_reduction <maximumf>, %64, %cst_37 [0] : vector<12x8xf32> to vector<8xf32>
    %66 = vector.shape_cast %65 : vector<8xf32> to vector<1x8xf32>
    %67 = vector.broadcast %66 : vector<1x8xf32> to vector<12x8xf32>
    %68 = arith.subf %64, %67 : vector<12x8xf32>
    %69 = math.exp %68 : vector<12x8xf32>
    %cst_38 = arith.constant dense<0.000000e+00> : vector<8xf32>
    %70 = vector.multi_reduction <add>, %69, %cst_38 [0] : vector<12x8xf32> to vector<8xf32>
    %71 = vector.shape_cast %70 : vector<8xf32> to vector<1x8xf32>
    %72 = tpu.reciprocal %71 {approx = true} : vector<1x8xf32> -> vector<1x8xf32>
    %73 = vector.broadcast %72 : vector<1x8xf32> to vector<12x8xf32>
    %74 = arith.mulf %69, %73 : vector<12x8xf32>
    %cst_39 = arith.constant dense<0.000000e+00> : vector<8x32xf32>
    %75 = tpu.matmul %74, %55, %cst_39 {dimension_numbers = #tpu.dot_dimension_numbers<[0], [0], [1], [1], [0, 1, 1, 1], [], []>} : vector<12x8xf32>, vector<12x32xf32>, vector<8x32xf32> -> vector<8x32xf32>
    %c1 = arith.constant 1 : index
    %c0_40 = arith.constant 0 : index
    %c0_41 = arith.constant 0 : index
    %76 = vector.load %arg7[%c1, %c0_40, %c0_41] : memref<2x32x32xf32, #tpu.memory_space<vmem>>, vector<1x32x32xf32>
    %77 = vector.shape_cast %76 : vector<1x32x32xf32> to vector<32x32xf32>
    %78 = arith.truncf %55 : vector<12x32xf32> to vector<12x32xbf16>
    %79 = arith.truncf %77 : vector<32x32xf32> to vector<32x32xbf16>
    %cst_42 = arith.constant dense<0.000000e+00> : vector<12x32xf32>
    %80 = tpu.matmul %78, %79, %cst_42 {dimension_numbers = #tpu.dot_dimension_numbers<[1], [0], [0], [1], [0, 0, 1, 1], [], []>} : vector<12x32xbf16>, vector<32x32xbf16>, vector<12x32xf32> -> vector<12x32xf32>
    %c1_43 = arith.constant 1 : index
    %c0_44 = arith.constant 0 : index
    %c0_45 = arith.constant 0 : index
    %81 = vector.load %arg8[%c1_43, %c0_44, %c0_45] : memref<2x2x32xf32, #tpu.memory_space<vmem>>, vector<1x2x32xf32>
    %82 = vector.shape_cast %81 : vector<1x2x32xf32> to vector<2x32xf32>
    %83 = vector.extract_strided_slice %82 {offsets = [0, 0], sizes = [1, 32], strides = [1, 1]} : vector<2x32xf32> to vector<1x32xf32>
    %cst_46 = arith.constant dense<0.000000e+00> : vector<12x1xf32>
    %84 = tpu.matmul %80, %83, %cst_46 {dimension_numbers = #tpu.dot_dimension_numbers<[1], [1], [0], [0], [0, 0, 1, 0], [], []>} : vector<12x32xf32>, vector<1x32xf32>, vector<12x1xf32> -> vector<12x1xf32>
    %85 = vector.extract_strided_slice %82 {offsets = [1, 0], sizes = [1, 32], strides = [1, 1]} : vector<2x32xf32> to vector<1x32xf32>
    %cst_47 = arith.constant dense<0.000000e+00> : vector<1x12xf32>
    %86 = tpu.matmul %85, %80, %cst_47 {dimension_numbers = #tpu.dot_dimension_numbers<[1], [1], [0], [0], [0, 0, 1, 0], [], []>} : vector<1x32xf32>, vector<12x32xf32>, vector<1x12xf32> -> vector<1x12xf32>
    %87 = vector.broadcast %84 : vector<12x1xf32> to vector<12x12xf32>
    %88 = vector.broadcast %86 : vector<1x12xf32> to vector<12x12xf32>
    %89 = arith.addf %87, %88 : vector<12x12xf32>
    %cst_48 = arith.constant 0.000000e+00 : f32
    %90 = vector.broadcast %cst_48 : f32 to vector<12x12xf32>
    %91 = arith.cmpf oge, %89, %90 : vector<12x12xf32>
    %cst_49 = arith.constant 2.000000e-01 : f32
    %92 = vector.broadcast %cst_49 : f32 to vector<12x12xf32>
    %93 = arith.mulf %92, %89 : vector<12x12xf32>
    %94 = arith.select %91, %89, %93 : vector<12x12xi1>, vector<12x12xf32>
    %95 = arith.addf %94, %21 : vector<12x12xf32>
    %cst_50 = arith.constant dense<0xFF800000> : vector<12xf32>
    %96 = vector.multi_reduction <maximumf>, %95, %cst_50 [1] : vector<12x12xf32> to vector<12xf32>
    %97 = vector.shape_cast %96 : vector<12xf32> to vector<12x1xf32>
    %98 = vector.broadcast %97 : vector<12x1xf32> to vector<12x12xf32>
    %99 = arith.subf %95, %98 : vector<12x12xf32>
    %100 = math.exp %99 : vector<12x12xf32>
    %cst_51 = arith.constant dense<0.000000e+00> : vector<12xf32>
    %101 = vector.multi_reduction <add>, %100, %cst_51 [1] : vector<12x12xf32> to vector<12xf32>
    %102 = vector.shape_cast %101 : vector<12xf32> to vector<12x1xf32>
    %103 = tpu.reciprocal %102 {approx = true} : vector<12x1xf32> -> vector<12x1xf32>
    %104 = vector.broadcast %103 : vector<12x1xf32> to vector<12x12xf32>
    %105 = arith.mulf %100, %104 : vector<12x12xf32>
    %106 = arith.truncf %105 : vector<12x12xf32> to vector<12x12xbf16>
    %107 = arith.truncf %80 : vector<12x32xf32> to vector<12x32xbf16>
    %cst_52 = arith.constant dense<0.000000e+00> : vector<12x32xf32>
    %108 = tpu.matmul %106, %107, %cst_52 {dimension_numbers = #tpu.dot_dimension_numbers<[1], [0], [0], [1], [0, 0, 1, 1], [], []>} : vector<12x12xbf16>, vector<12x32xbf16>, vector<12x32xf32> -> vector<12x32xf32>
    %109 = arith.addf %108, %55 : vector<12x32xf32>
    %c1_53 = arith.constant 1 : index
    %c0_54 = arith.constant 0 : index
    %c0_55 = arith.constant 0 : index
    %110 = vector.load %arg9[%c1_53, %c0_54, %c0_55] : memref<2x32x8xf32, #tpu.memory_space<vmem>>, vector<1x32x8xf32>
    %111 = vector.shape_cast %110 : vector<1x32x8xf32> to vector<32x8xf32>
    %112 = arith.truncf %109 : vector<12x32xf32> to vector<12x32xbf16>
    %113 = arith.truncf %111 : vector<32x8xf32> to vector<32x8xbf16>
    %cst_56 = arith.constant dense<0.000000e+00> : vector<12x8xf32>
    %114 = tpu.matmul %112, %113, %cst_56 {dimension_numbers = #tpu.dot_dimension_numbers<[1], [0], [0], [1], [0, 0, 1, 1], [], []>} : vector<12x32xbf16>, vector<32x8xbf16>, vector<12x8xf32> -> vector<12x8xf32>
    %c1_57 = arith.constant 1 : index
    %c0_58 = arith.constant 0 : index
    %c0_59 = arith.constant 0 : index
    %115 = vector.load %arg10[%c1_57, %c0_58, %c0_59] : memref<2x1x8xf32, #tpu.memory_space<vmem>>, vector<1x1x8xf32>
    %116 = vector.shape_cast %115 : vector<1x1x8xf32> to vector<1x8xf32>
    %117 = vector.broadcast %116 : vector<1x8xf32> to vector<12x8xf32>
    %118 = arith.addf %114, %117 : vector<12x8xf32>
    %cst_60 = arith.constant dense<0xFF800000> : vector<8xf32>
    %119 = vector.multi_reduction <maximumf>, %118, %cst_60 [0] : vector<12x8xf32> to vector<8xf32>
    %120 = vector.shape_cast %119 : vector<8xf32> to vector<1x8xf32>
    %121 = vector.broadcast %120 : vector<1x8xf32> to vector<12x8xf32>
    %122 = arith.subf %118, %121 : vector<12x8xf32>
    %123 = math.exp %122 : vector<12x8xf32>
    %cst_61 = arith.constant dense<0.000000e+00> : vector<8xf32>
    %124 = vector.multi_reduction <add>, %123, %cst_61 [0] : vector<12x8xf32> to vector<8xf32>
    %125 = vector.shape_cast %124 : vector<8xf32> to vector<1x8xf32>
    %126 = tpu.reciprocal %125 {approx = true} : vector<1x8xf32> -> vector<1x8xf32>
    %127 = vector.broadcast %126 : vector<1x8xf32> to vector<12x8xf32>
    %128 = arith.mulf %123, %127 : vector<12x8xf32>
    %cst_62 = arith.constant dense<0.000000e+00> : vector<8x32xf32>
    %129 = tpu.matmul %128, %109, %cst_62 {dimension_numbers = #tpu.dot_dimension_numbers<[0], [0], [1], [1], [0, 1, 1, 1], [], []>} : vector<12x8xf32>, vector<12x32xf32>, vector<8x32xf32> -> vector<8x32xf32>
    %130 = tpu.concatenate %75, %129 in 1 : vector<8x32xf32>, vector<8x32xf32> -> vector<8x64xf32>
    %c0_63 = arith.constant 0 : index
    %c0_64 = arith.constant 0 : index
    %131 = vector.load %arg11[%c0_63, %c0_64] : memref<64x4xf32, #tpu.memory_space<vmem>>, vector<64x4xf32>
    %132 = arith.truncf %130 : vector<8x64xf32> to vector<8x64xbf16>
    %133 = arith.truncf %131 : vector<64x4xf32> to vector<64x4xbf16>
    %cst_65 = arith.constant dense<0.000000e+00> : vector<8x4xf32>
    %134 = tpu.matmul %132, %133, %cst_65 {dimension_numbers = #tpu.dot_dimension_numbers<[1], [0], [0], [1], [0, 0, 1, 1], [], []>} : vector<8x64xbf16>, vector<64x4xbf16>, vector<8x4xf32> -> vector<8x4xf32>
    %c0_66 = arith.constant 0 : index
    %c0_67 = arith.constant 0 : index
    %135 = vector.load %arg12[%c0_66, %c0_67] : memref<1x4xf32, #tpu.memory_space<vmem>>, vector<1x4xf32>
    %136 = vector.broadcast %135 : vector<1x4xf32> to vector<8x4xf32>
    %137 = arith.addf %134, %136 : vector<8x4xf32>
    %cst_68 = arith.constant 0.000000e+00 : f32
    %138 = vector.broadcast %cst_68 : f32 to vector<8x4xf32>
    %139 = arith.maximumf %137, %138 : vector<8x4xf32>
    %c0_69 = arith.constant 0 : index
    %c0_70 = arith.constant 0 : index
    %140 = vector.load %arg14[%c0_69, %c0_70] : memref<1x128xf32, #tpu.memory_space<vmem>>, vector<1x128xf32>
    %c0_71 = arith.constant 0 : index
    %c0_72 = arith.constant 0 : index
    %141 = vector.load %arg13[%c0_71, %c0_72] : memref<32x128xf32, #tpu.memory_space<vmem>>, vector<8x128xf32>
    %142 = vector.extract_strided_slice %139 {offsets = [0, 0], sizes = [8, 1], strides = [1, 1]} : vector<8x4xf32> to vector<8x1xf32>
    %cst_73 = arith.constant dense<0.000000e+00> : vector<1x128xf32>
    %143 = tpu.matmul %142, %141, %cst_73 {dimension_numbers = #tpu.dot_dimension_numbers<[0], [0], [1], [1], [0, 1, 1, 1], [], []>} : vector<8x1xf32>, vector<8x128xf32>, vector<1x128xf32> -> vector<1x128xf32>
    %144 = arith.addf %140, %143 : vector<1x128xf32>
    %c8 = arith.constant 8 : index
    %c0_74 = arith.constant 0 : index
    %145 = vector.load %arg13[%c8, %c0_74] : memref<32x128xf32, #tpu.memory_space<vmem>>, vector<8x128xf32>
    %146 = vector.extract_strided_slice %139 {offsets = [0, 1], sizes = [8, 1], strides = [1, 1]} : vector<8x4xf32> to vector<8x1xf32>
    %cst_75 = arith.constant dense<0.000000e+00> : vector<1x128xf32>
    %147 = tpu.matmul %146, %145, %cst_75 {dimension_numbers = #tpu.dot_dimension_numbers<[0], [0], [1], [1], [0, 1, 1, 1], [], []>} : vector<8x1xf32>, vector<8x128xf32>, vector<1x128xf32> -> vector<1x128xf32>
    %148 = arith.addf %144, %147 : vector<1x128xf32>
    %c16 = arith.constant 16 : index
    %c0_76 = arith.constant 0 : index
    %149 = vector.load %arg13[%c16, %c0_76] : memref<32x128xf32, #tpu.memory_space<vmem>>, vector<8x128xf32>
    %150 = vector.extract_strided_slice %139 {offsets = [0, 2], sizes = [8, 1], strides = [1, 1]} : vector<8x4xf32> to vector<8x1xf32>
    %cst_77 = arith.constant dense<0.000000e+00> : vector<1x128xf32>
    %151 = tpu.matmul %150, %149, %cst_77 {dimension_numbers = #tpu.dot_dimension_numbers<[0], [0], [1], [1], [0, 1, 1, 1], [], []>} : vector<8x1xf32>, vector<8x128xf32>, vector<1x128xf32> -> vector<1x128xf32>
    %152 = arith.addf %148, %151 : vector<1x128xf32>
    %c24 = arith.constant 24 : index
    %c0_78 = arith.constant 0 : index
    %153 = vector.load %arg13[%c24, %c0_78] : memref<32x128xf32, #tpu.memory_space<vmem>>, vector<8x128xf32>
    %154 = vector.extract_strided_slice %139 {offsets = [0, 3], sizes = [8, 1], strides = [1, 1]} : vector<8x4xf32> to vector<8x1xf32>
    %cst_79 = arith.constant dense<0.000000e+00> : vector<1x128xf32>
    %155 = tpu.matmul %154, %153, %cst_79 {dimension_numbers = #tpu.dot_dimension_numbers<[0], [0], [1], [1], [0, 1, 1, 1], [], []>} : vector<8x1xf32>, vector<8x128xf32>, vector<1x128xf32> -> vector<1x128xf32>
    %156 = arith.addf %152, %155 : vector<1x128xf32>
    %cst_80 = arith.constant 0.000000e+00 : f32
    %157 = vector.broadcast %cst_80 : f32 to vector<1x128xf32>
    %158 = arith.maximumf %156, %157 : vector<1x128xf32>
    %c0_81 = arith.constant 0 : index
    %c0_82 = arith.constant 0 : index
    %159 = vector.load %arg15[%c0_81, %c0_82] : memref<128x2xf32, #tpu.memory_space<vmem>>, vector<128x2xf32>
    %160 = arith.truncf %158 : vector<1x128xf32> to vector<1x128xbf16>
    %161 = arith.truncf %159 : vector<128x2xf32> to vector<128x2xbf16>
    %cst_83 = arith.constant dense<0.000000e+00> : vector<1x2xf32>
    %162 = tpu.matmul %160, %161, %cst_83 {dimension_numbers = #tpu.dot_dimension_numbers<[1], [0], [0], [1], [0, 0, 1, 1], [], []>} : vector<1x128xbf16>, vector<128x2xbf16>, vector<1x2xf32> -> vector<1x2xf32>
    %c0_84 = arith.constant 0 : index
    %c0_85 = arith.constant 0 : index
    %163 = vector.load %arg16[%c0_84, %c0_85] : memref<1x2xf32, #tpu.memory_space<vmem>>, vector<1x2xf32>
    %164 = arith.addf %162, %163 : vector<1x2xf32>
    %165 = arith.negf %164 : vector<1x2xf32>
    %166 = math.exp %165 : vector<1x2xf32>
    %cst_86 = arith.constant 1.000000e+00 : f32
    %167 = vector.broadcast %cst_86 : f32 to vector<1x2xf32>
    %168 = arith.addf %167, %166 : vector<1x2xf32>
    %169 = arith.divf %167, %168 : vector<1x2xf32>
    %c0_87 = arith.constant 0 : index
    %c0_88 = arith.constant 0 : index
    %c0_89 = arith.constant 0 : index
    %170 = vector.load %arg17[%c0_87, %c0_88, %c0_89] : memref<1x1x2xf32, #tpu.memory_space<vmem>>, vector<1x1x2xf32>
    %171 = vector.shape_cast %170 : vector<1x1x2xf32> to vector<1x2xf32>
    %172 = vector.shape_cast %169 : vector<1x2xf32> to vector<1x1x2xf32>
    tpu.vector_store %arg17[%c0_87, %c0_88, %c0_89], %172 {strides = array<i32>} : memref<1x1x2xf32, #tpu.memory_space<vmem>>, vector<1x1x2xf32>,
    return
  }
  func.func @transform_0(%arg0: i32) -> (i32, i32, i32) {
    %c0_i32 = arith.constant 0 : i32
    %c0_i32_0 = arith.constant 0 : i32
    %c0_i32_1 = arith.constant 0 : i32
    return %arg0, %c0_i32, %c0_i32_0 : i32, i32, i32
  }
  func.func @transform_1(%arg0: i32) -> (i32, i32, i32) {
    %c0_i32 = arith.constant 0 : i32
    %c0_i32_0 = arith.constant 0 : i32
    %c0_i32_1 = arith.constant 0 : i32
    return %arg0, %c0_i32, %c0_i32_0 : i32, i32, i32
  }
  func.func @transform_2(%arg0: i32) -> (i32, i32) {
    %c0_i32 = arith.constant 0 : i32
    %c0_i32_0 = arith.constant 0 : i32
    %c0_i32_1 = arith.constant 0 : i32
    return %c0_i32, %c0_i32_0 : i32, i32
  }
  func.func @transform_3(%arg0: i32) -> (i32, i32) {
    %c0_i32 = arith.constant 0 : i32
    %c0_i32_0 = arith.constant 0 : i32
    %c0_i32_1 = arith.constant 0 : i32
    return %c0_i32, %c0_i32_0 : i32, i32
  }
  func.func @transform_4(%arg0: i32) -> (i32, i32) {
    %c0_i32 = arith.constant 0 : i32
    %c0_i32_0 = arith.constant 0 : i32
    %c0_i32_1 = arith.constant 0 : i32
    return %c0_i32, %c0_i32_0 : i32, i32
  }
  func.func @transform_5(%arg0: i32) -> (i32, i32) {
    %c0_i32 = arith.constant 0 : i32
    %c0_i32_0 = arith.constant 0 : i32
    %c0_i32_1 = arith.constant 0 : i32
    return %c0_i32, %c0_i32_0 : i32, i32
  }
  func.func @transform_6(%arg0: i32) -> (i32, i32, i32) {
    %c0_i32 = arith.constant 0 : i32
    %c0_i32_0 = arith.constant 0 : i32
    %c0_i32_1 = arith.constant 0 : i32
    %c0_i32_2 = arith.constant 0 : i32
    return %c0_i32, %c0_i32_0, %c0_i32_1 : i32, i32, i32
  }
  func.func @transform_7(%arg0: i32) -> (i32, i32, i32) {
    %c0_i32 = arith.constant 0 : i32
    %c0_i32_0 = arith.constant 0 : i32
    %c0_i32_1 = arith.constant 0 : i32
    %c0_i32_2 = arith.constant 0 : i32
    return %c0_i32, %c0_i32_0, %c0_i32_1 : i32, i32, i32
  }
  func.func @transform_8(%arg0: i32) -> (i32, i32, i32) {
    %c0_i32 = arith.constant 0 : i32
    %c0_i32_0 = arith.constant 0 : i32
    %c0_i32_1 = arith.constant 0 : i32
    %c0_i32_2 = arith.constant 0 : i32
    return %c0_i32, %c0_i32_0, %c0_i32_1 : i32, i32, i32
  }
  func.func @transform_9(%arg0: i32) -> (i32, i32, i32) {
    %c0_i32 = arith.constant 0 : i32
    %c0_i32_0 = arith.constant 0 : i32
    %c0_i32_1 = arith.constant 0 : i32
    %c0_i32_2 = arith.constant 0 : i32
    return %c0_i32, %c0_i32_0, %c0_i32_1 : i32, i32, i32
  }
  func.func @transform_10(%arg0: i32) -> (i32, i32) {
    %c0_i32 = arith.constant 0 : i32
    %c0_i32_0 = arith.constant 0 : i32
    %c0_i32_1 = arith.constant 0 : i32
    return %c0_i32, %c0_i32_0 : i32, i32
  }
  func.func @transform_11(%arg0: i32) -> (i32, i32) {
    %c0_i32 = arith.constant 0 : i32
    %c0_i32_0 = arith.constant 0 : i32
    %c0_i32_1 = arith.constant 0 : i32
    return %c0_i32, %c0_i32_0 : i32, i32
  }
  func.func @transform_12(%arg0: i32) -> (i32, i32) {
    %c0_i32 = arith.constant 0 : i32
    %c0_i32_0 = arith.constant 0 : i32
    %c0_i32_1 = arith.constant 0 : i32
    return %c0_i32, %c0_i32_0 : i32, i32
  }
  func.func @transform_13(%arg0: i32) -> (i32, i32) {
    %c0_i32 = arith.constant 0 : i32
    %c0_i32_0 = arith.constant 0 : i32
    %c0_i32_1 = arith.constant 0 : i32
    return %c0_i32, %c0_i32_0 : i32, i32
  }
  func.func @transform_14(%arg0: i32) -> (i32, i32) {
    %c0_i32 = arith.constant 0 : i32
    %c0_i32_0 = arith.constant 0 : i32
    %c0_i32_1 = arith.constant 0 : i32
    return %c0_i32, %c0_i32_0 : i32, i32
  }
  func.func @transform_15(%arg0: i32) -> (i32, i32) {
    %c0_i32 = arith.constant 0 : i32
    %c0_i32_0 = arith.constant 0 : i32
    %c0_i32_1 = arith.constant 0 : i32
    return %c0_i32, %c0_i32_0 : i32, i32
  }
  func.func @transform_16(%arg0: i32) -> (i32, i32, i32) {
    %c0_i32 = arith.constant 0 : i32
    %c0_i32_0 = arith.constant 0 : i32
    %c0_i32_1 = arith.constant 0 : i32
    return %arg0, %c0_i32, %c0_i32_0 : i32, i32, i32
  }
}

</mosaic_0001>

<bundles_post_ra>
// kernel: giattpnp_forward.1
= control target key start
LH: loop header
LB: loop body
LE: loop exit
PB: predicated region body
PF: predicated region fallthrough
CT: control target
= control target key end

     0   :  { %s3134_s0 = inlined_call_operand.vmem [shape: f32[2,12,16], index: 0, kind: input, shape index: {}]   ;;  %s3135_s1 = inlined_call_operand.vmem [shape: f32[2,12,12], index: 1, kind: input, shape index: {}]   ;;  %s3136_s2 = inlined_call_operand.vmem [shape: f32[16,32], index: 2, kind: input, shape index: {}]   ;;  %s3137_s3 = inlined_call_operand.vmem [shape: f32[1,32], index: 3, kind: input, shape index: {}]   ;;  %s3138_s4 = inlined_call_operand.vmem [shape: f32[32,32], index: 4, kind: input, shape index: {}]   ;;  %s3139_s5 = inlined_call_operand.vmem [shape: f32[1,32], index: 5, kind: input, shape index: {}]   ;;  %s3140_s6 = inlined_call_operand.vmem [shape: f32[2,32,32], index: 6, kind: input, shape index: {}]   ;;  %s3141_s7 = inlined_call_operand.vmem [shape: f32[2,2,32], index: 7, kind: input, shape index: {}]   ;;  %s3142_s8 = inlined_call_operand.vmem [shape: f32[2,32,8], index: 8, kind: input, shape index: {}]   ;;  %s3143_s9 = inlined_call_operand.vmem [shape: f32[2,1,8], index: 9, kind: input, shape index: {}]   ;;  %s3144_s10 = inlined_call_operand.vmem [shape: f32[64,4], index: 10, kind: input, shape index: {}]   ;;  %s3145_s11 = inlined_call_operand.vmem [shape: f32[1,4], index: 11, kind: input, shape index: {}]   ;;  %s3146_s12 = inlined_call_operand.vmem [shape: f32[32,128], index: 12, kind: input, shape index: {}]   ;;  %s3147_s13 = inlined_call_operand.vmem [shape: f32[1,128], index: 13, kind: input, shape index: {}]   ;;  %s3148_s14 = inlined_call_operand.vmem [shape: f32[128,2], index: 14, kind: input, shape index: {}]   ;;  %s3149_s15 = inlined_call_operand.vmem [shape: f32[1,2], index: 15, kind: input, shape index: {}]   ;;  %s3150_s16 = inlined_call_operand.hbm [shape: f32[2,1,2], index: 16, kind: output, shape index: {}]  }
   0x1   :  { %3154 = sst [smem:[#allocation8_spill]] %s3134_s0 }
   0x2   :  { %3155 = sst [smem:[#allocation9_spill]] %s3135_s1 }
   0x3   :  { %3156 = sst [smem:[#allocation10_spill]] %s3136_s2 }
   0x4   :  { %21 = vsyncpa [#allocation3], 0 }
   0x5   :  { %23 = vsyncpa [#allocation3 + $0x1], 0  ;;  %s2683_s21 = smov 0   ;;  %s2685_s22 = smov 0  }
   0x6   :  { %s2687_s23 = smov 0   ;;  %s2689_s24 = smov 0  }
   0x7 LB: > { %3157 = sst [smem:[#allocation5_spill]] %s2583_s23  ;;  %s2704_s25 = sadd.s32 4294967295, %s2587_s24   ;;  %s2587_s24 = sphi %s2689_s24, %s3169_s24   ;;  %s2583_s23 = sphi %s2687_s23, %s3171_s23   ;;  %s2579_s22 = sphi %s2685_s22, %s3173_s22   ;;  %s2575_s21 = sphi %s2683_s21, %s3172_s21  }
   0x8   : > { %s2178_s26 = sadd.s32 4294967294, %s2587_s24   ;;  %s2708_s27 = sadd.s32 1, %s2587_s24  }
   0x9   : > { %3158 = sst [smem:[#allocation6_spill]] %s2708_s27  ;;  %s382_s28 = sadd.s32 1, %s2583_s23 }
   0xa   : > { %s379_s29 = ssub.s32 %s2587_s24, %s2708_s27  ;;  %p392_p0 = scmp.ne.s32.totalorder %s2583_s23, %s2579_s22 }
   0xb   : > { %p380_p1 = scmp.eq.s32.totalorder %s379_s29, 0  ;;  %p393_p2 = scmp.eq.s32.totalorder %s2704_s25, 1 }
   0xc   : > { %p398_p3 = scmp.ne.s32.totalorder %s2579_s22, %s2575_s21  ;;  %p399_p4 = scmp.eq.s32.totalorder %s2178_s26, 1 }
   0xd   : > { %s2719_s30 = scalar_select %p380_p1, %s2583_s23, %s382_s28  }
   0xe   : > { %p2721_p5 = por %p393_p2, %p392_p0  ;;  %p2725_p6 = por %p399_p4, %p398_p3 }
   0xf   : > { %3159 = sst [smem:[#allocation7_spill]] %s2719_s30  ;;  %p2181_p7 = scmp.ge.s32.totalorder %s2587_s24, 1 }
  0x10   : > { %p475_p8 = scmp.lt.s32.totalorder %s2587_s24, 3 }
  0x12   : > { %p476_p9 = pnand %p2181_p7, %p475_p8 }
  0x13   : > { %s3162_s2 = sld [smem:[#allocation10_spill]] (!%p476_p9)  ;;  %p529_p10 = scmp.lt.s32.totalorder (!%p476_p9), %s2704_s25, 1  ;;  %v2589_v2 = vmov (!%p476_p9), 0.0   ;;  %vm2590_vm0 = vmmov (!%p476_p9), 0   ;;  %vm553_vm1 = vcmask (!%p476_p9), 130048   ;;  %v600_v7 = vld [vmem:[%s3138_s4] sm:$0xff] (!%p476_p9)  ;;  %v715_v40 = vlaneseq (!%p476_p9) }
  0x14   : > { %479 = sbr.rel (%p476_p9) target bundleno = 4309 (0x10d5), region = 84  ;;  %2285 = vmatprep.subr.bf16.mxu0 (!%p476_p9), %v2589_v2  ;;  %2287 = vmatprep.mubr.msk.bf16.mxu0 (!%p476_p9), %vm2590_vm0, %v2589_v2  ;;  %s3163_s20 = sld [smem:[#allocation8_spill]] (!%p476_p9)  ;;  %v601_v8 = vld [vmem:[%s3138_s4 + $0x8] sm:$0xff] (!%p476_p9)  ;;  %v602_v10 = vld [vmem:[%s3138_s4 + $0x10] sm:$0xff] (!%p476_p9)  ;;  %v603_v11 = vld [vmem:[%s3138_s4 + $0x18] sm:$0xff] (!%p476_p9)  ;;  %vm614_vm2 = vcmask (!%p476_p9), 261120  }
  0x15   : > { %2320 = vmatprep.subr.bf16.mxu1 (!%p476_p9), %v2589_v2  ;;  %2324 = vmatprep.mubr.msk.bf16.mxu1 (!%p476_p9), %vm2590_vm0, %v2589_v2  ;;  %v605_v9 = vpack.c.bf16 (!%p476_p9), %v601_v8, %v600_v7  ;;  %v606_v12 = vpack.c.bf16 (!%p476_p9), %v603_v11, %v602_v10  ;;  %v2186_v13 = vld [vmem:[%s3137_s3] ss:$0 sm:$0xff] (!%p476_p9)  ;;  %v664_v24 = vld [vmem:[%s3140_s6 + $0x8] sm:$0xff] (!%p476_p9)  ;;  %v665_v26 = vld [vmem:[%s3140_s6 + $0x10] sm:$0xff] (!%p476_p9)  ;;  %v2591_v39 = vmov (!%p476_p9), 0.0|0.0   ;;  %v716_v41 = vshrl.u32 (!%p476_p9), %v715_v40, 7 }
  0x16   : > { %v663_v23 = vld [vmem:[%s3140_s6] sm:$0xff] (!%p476_p9)  ;;  %v666_v27 = vld [vmem:[%s3140_s6 + $0x18] sm:$0xff] (!%p476_p9)  ;;  %vm2814_vm3 = vmpackc.low (!%p476_p9), %vm614_vm2, %vm614_vm2  ;;  %vm724_vm4 = vcmask (!%p476_p9), 257024   ;;  %vm851_vm5 = vcmask (!%p476_p9), 1045504   ;;  %s3166_s1 = sld [smem:[#allocation9_spill]] (!%p476_p9)  ;;  %vm822_vm8 = vcmask (!%p476_p9), 97280  }
  0x17   : > { %v668_v25 = vpack.c.bf16 (!%p476_p9), %v664_v24, %v663_v23  ;;  %v669_v28 = vpack.c.bf16 (!%p476_p9), %v666_v27, %v665_v26  ;;  %v2188_v29 = vld [vmem:[%s3139_s5] ss:$0 sm:$0xff] (!%p476_p9)  ;;  %v2806_v42 = vsub.s32 (!%p476_p9), 0, %v716_v41  ;;  %vm826_vm9 = vcmask (!%p476_p9), 93184   ;;  %s2593_s19 = smov (!%p476_p9), 32   ;;  %s2595_s30 = smov (!%p476_p9), 127  }
  0x18   : > { %v714_v43 = vld [vmem:[%s3141_s7] sm:$0x3] (!%p476_p9)  ;;  %vm1018_vm10 = vcmask (!%p476_p9), 1043456   ;;  %vm2592_vm11 = vmmov (!%p476_p9), 1   ;;  %vm954_vm13 = vcmask (!%p476_p9), 64512   ;;  %vm956_vm14 = vcmask (!%p476_p9), 60416  }
  0x19   : > { %v542_v0 = vld [vmem:[%s3162_s2] sm:$0xff] (!%p476_p9)  ;;  %v543_v1 = vld [vmem:[%s3162_s2 + $0x8] sm:$0xff] (!%p476_p9)  ;;  %v718_v44 = vrot.slane (!%p476_p9), %v714_v43, %v2806_v42  ;;  %v729_v55 = vrot.slane (!%p476_p9), %v714_v43, 1  ;;  %vm2875_vm12 = vmpackc.low (!%p476_p9), %vm1018_vm10, %vm2592_vm11  ;;  %s2596_s23 = smov (!%p476_p9), 125  }
  0x1a   : > { %v545_v3 = vpack.c.bf16 (!%p476_p9), %v543_v1, %v542_v0  ;;  %v2199_v41 = vld [vmem:[%s3140_s6 + $0x20] sm:$0xff] (!%p476_p9)  ;;  %v2200_v43 = vld [vmem:[%s3140_s6 + $0x28] sm:$0xff] (!%p476_p9) }
  0x1b   : > { %s2742_s28 = scalar_select %p529_p10, %s2704_s25, 1 }
  0x1c   : > { %2286 = vmatpush3.bf16.msra.mxu0 %v545_v3 }
  0x1d   : > { %s2228_s29 = sshll.u32 %s2742_s28, 4  ;;  %2291 = vmatprep.subr.bf16.mxu0 %v2589_v2 }
  0x1e   : > { %s533_s26 = scalar_lea.vmem %s3163_s20, %s2228_s29  ;;  %s538_s2 = scalar_lea.vmem %s3166_s1, %s2228_s29 }
  0x1f   : > { %v540_v4 = vld [vmem:[%s533_s26] sm:$0xff]  ;;  %v541_v5 = vld [vmem:[%s533_s26 + $0x8] sm:$0xf]  ;;  %s2594_s29 = smov 126   ;;  %s2225_s20 = sshll.u32 %s2704_s25, 4 }
  0x20   : > { %v544_v6 = vpack.c.bf16 %v541_v5, %v540_v4  ;;  %v2834_v0 = vld [vmem:[%s538_s2] sm:$0xff]  ;;  %v2836_v5 = vld [vmem:[%s538_s2 + $0x8] sm:$0xf]  ;;  %s2597_s25 = smov [#allocation2]  }
  0x21   : > { %s2529_s18 = sshll.u32 %s2597_s25, 4  ;;  %s2530_s18 = int_to_ptr.vmem [resolvable:$false] %s2529_s18 }
  0x22   : > { %2288 = vmatmul.mubr.msk.bf16.vlgmr.msra.gmra.mrb[0].mxu0 %vm553_vm1, %v544_v6  ;;  %s2531_s1 = scalar_lea.vmem %s2530_s18, 32 }
  0x23   : > { %2295 = vmatprep.mubr.msk.bf16.mxu0 %vm2590_vm0, %v2589_v2  ;;  %2292 = vmatpush3.bf16.msra.mxu0 %v605_v9 }
  0x24   : > { %2293 = vmatprep.subr.bf16.mxu0 %v2589_v2 }
  0x27   : > { %2294 = vmatpush3.bf16.msra.mxu0 %v606_v12 }
  0x28   : > { %2299 = vmatprep.subr.bf16.mxu0 %v2589_v2 }
  0xf5   : > { %v591_v14 = vpop.f32.mrb[0].mxu0 }
  0xf6   : > { %v592_v15 = vadd.f32 %v2186_v13, %v591_v14  ;;  %v2289_v16 = vpop.f32.mrb[1].mxu0 }
  0xf7   : > { %v594_v17 = vpop.f32.mrb[2].mxu0 }
  0xf8   : > { %v595_v18 = vadd.f32 %v2186_v13, %v594_v17  ;;  %v2290_v19 = vpop.f32.mrb[3].mxu0  ;;  %v598_v20 = vmax.f32 %v592_v15, 0.0 }
  0xfa   : > { %v599_v21 = vmax.f32 %v595_v18, 0.0 }
  0xfc   : > { %v604_v22 = vpack.c.bf16 %v599_v21, %v598_v20 }
  0xfe   : > { %2296 = vmatmul.mubr.msk.bf16.vlgmr.msra.gmra.mrb[4].mxu0 %vm614_vm2, %v604_v22 }
  0xff   : > { %2303 = vmatprep.mubr.msk.bf16.mxu0 %vm2590_vm0, %v2589_v2  ;;  %2300 = vmatpush3.bf16.msra.mxu0 %v668_v25 }
 0x100   : > { %2301 = vmatprep.subr.bf16.mxu0 %v2589_v2 }
 0x103   : > { %2302 = vmatpush3.bf16.msra.mxu0 %v669_v28  ;;  %v896_v28 = vld [vmem:[%s3142_s8] sm:$0xff] }
 0x104   : > { %2423 = vmatprep.subr.bf16.mxu0 %v2591_v39 }
 0x1d1   : > { %v652_v30 = vpop.f32.mrb[4].mxu0 }
 0x1d2   : > { %v2792_v31 = vadd.f32 %v2188_v29, %v652_v30  ;;  %v2297_v32 = vpop.f32.mrb[5].mxu0 }
 0x1d3   : > { %v655_v33 = vpop.f32.mrb[6].mxu0  ;;  %v898_v32 = vld [vmem:[%s3142_s8 + $0x10] sm:$0xff] }
 0x1d4   : > { %v2794_v34 = vadd.f32 %v2188_v29, %v655_v33  ;;  %v2298_v35 = vpop.f32.mrb[7].mxu0  ;;  %v659_v36 = vmax.f32 %v2792_v31, 0.0  ;;  %v897_v29 = vld [vmem:[%s3142_s8 + $0x8] sm:$0xff]  ;;  %v899_v33 = vld [vmem:[%s3142_s8 + $0x18] sm:$0xff]  ;;  %v2201_v31 = vld [vmem:[%s3140_s6 + $0x30] sm:$0xff] }
 0x1d5   : > { %v901_v30 = vpack.c.bf16 %v897_v29, %v896_v28  ;;  %v902_v35 = vpack.c.bf16 %v899_v33, %v898_v32 }
 0x1d6   : > { %v660_v37 = vmax.f32 %v2794_v34, 0.0  ;;  %v2202_v34 = vld [vmem:[%s3140_s6 + $0x38] sm:$0xff] }
 0x1d7   : > { %2321 = vmatpush3.bf16.msra.mxu1 %v901_v30 }
 0x1d8   : > { %v667_v38 = vpack.c.bf16 %v660_v37, %v659_v36  ;;  %2322 = vmatprep.subr.bf16.mxu1 %v2589_v2 }
 0x1da   : > { %2304 = vmatmul.mubr.msk.bf16.vlgmr.msra.gmra.mrb[8].mxu0 %vm614_vm2, %v667_v38 }
 0x1db   : > { %2311 = vmatprep.mubr.msk.f32.mxu0 %vm2590_vm0, %v2589_v2  ;;  %2323 = vmatpush3.bf16.msra.mxu1 %v902_v35 }
 0x1dc   : > { %2335 = vmatprep.subr.bf16.mxu1 %v2589_v2 }
 0x2ad   : > { %v707_v45 = vpop.f32.mrb[8].mxu0 }
 0x2ae   : > { %v2305_v46 = vpop.f32.mrb[9].mxu0  ;;  %v719_v47 = vmul.f32 %v718_v44, %v707_v45 }
 0x2af   : > { %v710_v48 = vpop.f32.mrb[10].mxu0 }
 0x2b0   : > { %v720_v50 = vmul.f32 %v718_v44, %v710_v48  ;;  %v2424_v51 = vpack.c.bf16 %v710_v48, %v707_v45  ;;  %v2306_v52 = vpop.f32.mrb[11].mxu0  ;;  %v721_v53 = vsel %vm614_vm2, %v719_v47, 0.0 }
 0x2b1   : > { %722 = vadd.xlane.f32.xlu0 %v721_v53 }
 0x2b2   : > { %2426 = vmatpush3.bf16.xpose.msk.msra.mxu0 %vm2814_vm3, %v2424_v51  ;;  %v725_v54 = vsel %vm724_vm4, %v720_v50, 0.0  ;;  %v853_v56 = vsel %vm851_vm5, %v2424_v51, 0  ;;  %v1097_v50 = vpack.c.bf16 %v2200_v43, %v2199_v41 }
 0x2b3   : > { %2314 = vmatprep.subr.bf16.mxu0 %v2589_v2 }
 0x2b5   : > { %726 = vadd.xlane.f32.xlu0 %v725_v54 }
 0x2b9   : > { %2312 = vmatmul.mubr.msk.f32.vlgmr.msra.gmra.mrb[12].mxu0 %vm614_vm2, %v729_v55 }
 0x2ba   : > { %2315 = vmatpush3.bf16.msra.mxu0 %v853_v56  ;;  %2316 = vmatprep.mubr.msk.bf16.mxu0 %vm2590_vm0, %v2589_v2  ;;  %v2204_v56 = vld [vmem:[%s3141_s7 + $0x2] sm:$0x3] }
 0x2bb   : > { %2427 = vmatprep.subr.bf16.mxu0 %v2591_v39  ;;  %v1155_v41 = vrot.slane %v2204_v56, 1 }
 0x33e   : > { %v723_v57 = vpop.xlane.xlu0 %722 }
 0x342   : > { %v727_v61 = vpop.xlane.xlu0 %726 }
 0x38c   : > { %v804_v58 = vpop.f32.mrb[12].mxu0 }
 0x38d   : > { %v811_v59 = vrot.slane %v804_v58, %v2806_v42  ;;  %v2313_v60 = vpop.f32.mrb[13].mxu0 }
 0x38f   : > { %v812_v62 = vadd.f32 %v811_v59, %v723_v57  ;;  %v813_v63 = vadd.f32 %v811_v59, %v727_v61  ;;  %v1145_v61 = vrot.slane %v2204_v56, %v2806_v42 }
 0x391   : > { %v816_v1 = vmul.f32 0.2, %v812_v62  ;;  %v817_v3 = vmul.f32 0.2, %v813_v63  ;;  %vm814_vm6 = vcmp.ge.f32.partialorder %v812_v62, 0.0  ;;  %vm815_vm7 = vcmp.ge.f32.partialorder %v813_v63, 0.0 }
 0x393   : > { %v818_v4 = vsel %vm814_vm6, %v812_v62, %v816_v1  ;;  %v819_v6 = vsel %vm815_vm7, %v813_v63, %v817_v3 }
 0x394   : > { %v820_v7 = vadd.f32 %v818_v4, %v2834_v0  ;;  %v821_v9 = vadd.f32 %v819_v6, %v2836_v5 }
 0x396   : > { %v823_v8 = vsel %vm822_vm8, %v820_v7, -inf  ;;  %v827_v10 = vsel %vm826_vm9, %v821_v9, -inf }
 0x397   : > { %824 = vmax.xlane.f32.xlu1 %v823_v8 }
 0x39b   : > { %828 = vmax.xlane.f32.xlu1 %v827_v10 }
 0x424   : > { %v825_v11 = vpop.xlane.xlu1 %824 }
 0x425   : > { %v830_v12 = vsub.f32 %v820_v7, %v825_v11 }
 0x427   : > { %v832_v13 = vmul.f32 1.442695, %v830_v12 }
 0x428   : > { %v829_v14 = vpop.xlane.xlu1 %828 }
 0x429   : > { %2493 = vpow2.f32 %v832_v13  ;;  %v831_v15 = vsub.f32 %v821_v9, %v829_v14 }
 0x42b   : > { %v834_v16 = vmul.f32 1.442695, %v831_v15 }
 0x42d   : > { %2495 = vpow2.f32 %v834_v16 }
 0x433   : > { %v2494_v17 = vpop.eup %2493 }
 0x434   : > { %v836_v18 = vsel %vm822_vm8, %v2494_v17, 0.0 }
 0x435   : > { %837 = vadd.xlane.f32.xlu0 %v836_v18 }
 0x437   : > { %v2496_v19 = vpop.eup %2495 }
 0x438   : > { %v839_v20 = vsel %vm826_vm9, %v2496_v19, 0.0 }
 0x439   : > { %840 = vadd.xlane.f32.xlu1 %v839_v20 }
 0x4c2   : > { %v838_v21 = vpop.xlane.xlu0 %837 }
 0x4c3   : > { %2497 = vrcp.f32 %v838_v21 }
 0x4c6   : > { %v841_v22 = vpop.xlane.xlu1 %840 }
 0x4c7   : > { %2499 = vrcp.f32 %v841_v22 }
 0x4cd   : > { %v2498_v23 = vpop.eup %2497 }
 0x4ce   : > { %v844_v25 = vmul.f32 %v2498_v23, %v2494_v17 }
 0x4d1   : > { %v2500_v24 = vpop.eup %2499 }
 0x4d2   : > { %v845_v26 = vmul.f32 %v2500_v24, %v2496_v19 }
 0x4d4   : > { %v846_v27 = vpack.c.bf16 %v845_v26, %v844_v25 }
 0x4d6   : > { %2317 = vmatmul.mubr.msk.bf16.vlgmr.msra.gmra.mrb[16].mxu0 %vm822_vm8, %v846_v27 }
 0x4d7   : > { %2332 = vmatprep.mubr.msk.f32.mxu0 %vm2590_vm0, %v2589_v2 }
 0x5a9   : > { %v889_v38 = vpop.f32.mrb[16].mxu0 }
 0x5aa   : > { %v2318_v40 = vpop.f32.mrb[17].mxu0  ;;  %v2869_v45 = vadd.f32 %v889_v38, %v659_v36  ;;  %v1098_v36 = vpack.c.bf16 %v2202_v34, %v2201_v31 }
 0x5ab   : > { %v892_v44 = vpop.f32.mrb[18].mxu0 }
 0x5ac   : > { %v2873_v46 = vadd.f32 %v892_v44, %v660_v37  ;;  %v2319_v47 = vpop.f32.mrb[19].mxu0  ;;  %v2195_v37 = vld [vmem:[%s3143_s9] ss:$0 sm:$0xff] }
 0x5ae   : > { %v900_v51 = vpack.c.bf16 %v2873_v46, %v2869_v45 }
 0x5b0   : > { %2325 = vmatmul.mubr.msk.bf16.vlgmr.msra.gmra.mrb[0].mxu1 %vm614_vm2, %v900_v51  ;;  %2430 = vmatpush3.bf16.msk.msra.mxu0 %vm2875_vm12, %v900_v51 }
 0x5b1   : > { %2336 = vmatpush3.bf16.msra.mxu1 %v1097_v50  ;;  %2339 = vmatprep.mubr.msk.bf16.mxu1 %vm2590_vm0, %v2589_v2 }
 0x5b2   : > { %2337 = vmatprep.subr.bf16.mxu1 %v2589_v2  ;;  %2431 = vmatprep.subr.bf16.mxu0 %v2591_v39 }
 0x5b5   : > { %2338 = vmatpush3.bf16.msra.mxu1 %v1098_v36 }
 0x5b6   : > { %2356 = vmatprep.subr.bf16.mxu1 %v2589_v2 }
 0x5b8   : > { %2340 = vmatmul.mubr.msk.bf16.vlgmr.msra.gmra.mrb[4].mxu1 %vm614_vm2, %v900_v51 }
 0x5b9   : > { %2360 = vmatprep.mubr.msk.bf16.mxu1 %vm2590_vm0, %v2589_v2 }
 0x683   : > { %v947_v52 = vpop.f32.mrb[0].mxu1 }
 0x684   : > { %v948_v53 = vadd.f32 %v2195_v37, %v947_v52  ;;  %v2326_v54 = vpop.f32.mrb[1].mxu1 }
 0x685   : > { %v950_v55 = vpop.f32.mrb[2].mxu1 }
 0x686   : > { %v951_v57 = vadd.f32 %v2195_v37, %v950_v55  ;;  %v2327_v58 = vpop.f32.mrb[3].mxu1  ;;  %v955_v59 = vsel %vm954_vm13, %v948_v53, -inf }
 0x688   : > { %v957_v60 = vsel %vm956_vm14, %v951_v57, -inf }
 0x689   : > { %v958_v62 = vmax.f32 %v955_v59, %v957_v60 }
 0x68b   : > { %v959_v63 = vrot.slane %v958_v62, 4  ;;  %v1133_v1 = vpop.f32.mrb[4].mxu1 }
 0x68c   : > { %v1146_v3 = vmul.f32 %v1145_v61, %v1133_v1  ;;  %v2341_v4 = vpop.f32.mrb[5].mxu1 }
 0x68d   : > { %v960_v6 = vmax.f32 %v958_v62, %v959_v63  ;;  %v1136_v7 = vpop.f32.mrb[6].mxu1 }
 0x68e   : > { %v1147_v8 = vmul.f32 %v1145_v61, %v1136_v7  ;;  %v2432_v9 = vpack.c.bf16 %v1136_v7, %v1133_v1  ;;  %v2342_v10 = vpop.f32.mrb[7].mxu1  ;;  %v1148_v11 = vsel %vm614_vm2, %v1146_v3, 0.0 }
 0x68f   : > { %v961_v12 = vrot.slane %v960_v6, 2  ;;  %1149 = vadd.xlane.f32.xlu1 %v1148_v11 }
 0x690   : > { %v1151_v14 = vsel %vm724_vm4, %v1147_v8, 0.0  ;;  %v1276_v43 = vsel %vm851_vm5, %v2432_v9, 0 }
 0x691   : > { %v962_v13 = vmax.f32 %v960_v6, %v961_v12  ;;  %v2209_v12 = vld [vmem:[%s3142_s8 + $0x20] sm:$0xff] }
 0x693   : > { %v963_v15 = vrot.slane %v962_v13, 1  ;;  %1152 = vadd.xlane.f32.xlu1 %v1151_v14 }
 0x695   : > { %v964_v16 = vmax.f32 %v962_v13, %v963_v15  ;;  %v2210_v13 = vld [vmem:[%s3142_s8 + $0x28] sm:$0xff]  ;;  %v2211_v15 = vld [vmem:[%s3142_s8 + $0x30] sm:$0xff] }
 0x696   : > { %v1325_v14 = vpack.c.bf16 %v2210_v13, %v2209_v12 }
 0x697   : > { %v965_v17 = vsub.f32 %v948_v53, %v964_v16  ;;  %v966_v18 = vsub.f32 %v951_v57, %v964_v16  ;;  %v2212_v16 = vld [vmem:[%s3142_s8 + $0x38] sm:$0xff] }
 0x698   : > { %2357 = vmatpush3.bf16.msra.mxu1 %v1325_v14 }
 0x699   : > { %v967_v19 = vmul.f32 1.442695, %v965_v17  ;;  %v969_v20 = vmul.f32 1.442695, %v966_v18  ;;  %2358 = vmatprep.subr.bf16.mxu1 %v2589_v2  ;;  %v1326_v17 = vpack.c.bf16 %v2212_v16, %v2211_v15  ;;  %v1585_v15 = vld [vmem:[%s3146_s12] sm:$0xff] }
 0x69a   : > { %v2218_v16 = vld [vmem:[%s3145_s11] ss:$0 sm:$0xff] }
 0x69b   : > { %2501 = vpow2.f32 %v967_v19 }
 0x69c   : > { %2503 = vpow2.f32 %v969_v20  ;;  %2359 = vmatpush3.bf16.msra.mxu1 %v1326_v17 }
 0x69d   : > { %2371 = vmatprep.subr.bf16.mxu1 %v2589_v2 }
 0x6a5   : > { %v2502_v21 = vpop.eup %2501 }
 0x6a6   : > { %v2504_v22 = vpop.eup %2503  ;;  %v971_v23 = vsel %vm954_vm13, %v2502_v21, 0.0 }
 0x6a7   : > { %v972_v24 = vsel %vm956_vm14, %v2504_v22, 0.0 }
 0x6a8   : > { %v973_v25 = vadd.f32 %v972_v24, %v971_v23 }
 0x6aa   : > { %v974_v26 = vrot.slane %v973_v25, 4 }
 0x6ac   : > { %v975_v27 = vadd.f32 %v974_v26, %v973_v25  ;;  %v2214_v25 = vld [vmem:[%s3143_s9 + $0x1] ss:$0 sm:$0xff] }
 0x6ae   : > { %v976_v28 = vrot.slane %v975_v27, 2 }
 0x6b0   : > { %v977_v29 = vadd.f32 %v976_v28, %v975_v27 }
 0x6b2   : > { %v978_v30 = vrot.slane %v977_v29, 1 }
 0x6b4   : > { %v979_v32 = vadd.f32 %v978_v30, %v977_v29 }
 0x6b6   : > { %2505 = vrcp.f32 %v979_v32 }
 0x6c0   : > { %v2506_v33 = vpop.eup %2505 }
 0x6c1   : > { %v981_v35 = vmul.f32 %v2506_v33, %v2502_v21  ;;  %v982_v38 = vmul.f32 %v2506_v33, %v2504_v22 }
 0x6c3   : > { %983 = vxpose.xlu0.b32.start [1/2] (short) (narrow) %v981_v35, 8 }
 0x6c7   : > { %984 = vxpose.xlu0.b32.end [2/2] (short) (narrow) %v982_v38, 8 }
 0x71c   : > { %v1150_v47 = vpop.xlane.xlu1 %1149 }
 0x720   : > { %v1153_v34 = vpop.xlane.xlu1 %1152 }
 0x743   : > { %v999_v40 = vpop.trf.xlu0 }
 0x744   : > { %2333 = vmatmul.mubr.msk.f32.vlgmr.msra.gmra.mrb[14].mxu0 %vm822_vm8, %v999_v40 }
 0x745   : > { %2434 = vmatpush3.bf16.xpose.msk.msra.mxu0 %vm2814_vm3, %v2432_v9  ;;  %2347 = vmatprep.mubr.msk.f32.mxu0 %vm2590_vm0, %v2589_v2  ;;  %vm1539_vm3 = vcmask 523264  }
 0x746   : > { %2350 = vmatprep.subr.bf16.mxu0 %v2589_v2 }
 0x74c   : > { %2348 = vmatmul.mubr.msk.f32.vlgmr.msra.gmra.mrb[20].mxu0 %vm614_vm2, %v1155_v41 }
 0x74d   : > { %2351 = vmatpush3.bf16.msra.mxu0 %v1276_v43  ;;  %2352 = vmatprep.mubr.msk.bf16.mxu0 %vm2590_vm0, %v2589_v2 }
 0x74e   : > { %2435 = vmatprep.subr.bf16.mxu0 %v2591_v39 }
 0x817   : > { %v2922_v44 = vpop.f32.mrb[14].mxu0 }
 0x818   : > { %v2334_v49 = vpop.f32.mrb[15].mxu0 }
 0x81f   : > { %v1230_v50 = vpop.f32.mrb[20].mxu0 }
 0x820   : > { %v1237_v51 = vrot.slane %v1230_v50, %v2806_v42  ;;  %v2349_v31 = vpop.f32.mrb[21].mxu0 }
 0x822   : > { %v1238_v36 = vadd.f32 %v1237_v51, %v1150_v47  ;;  %v1239_v37 = vadd.f32 %v1237_v51, %v1153_v34 }
 0x824   : > { %v1242_v52 = vmul.f32 0.2, %v1238_v36  ;;  %v1243_v53 = vmul.f32 0.2, %v1239_v37  ;;  %vm1240_vm15 = vcmp.ge.f32.partialorder %v1238_v36, 0.0  ;;  %vm1241_vm1 = vcmp.ge.f32.partialorder %v1239_v37, 0.0 }
 0x826   : > { %v1244_v54 = vsel %vm1240_vm15, %v1238_v36, %v1242_v52  ;;  %v1245_v55 = vsel %vm1241_vm1, %v1239_v37, %v1243_v53 }
 0x827   : > { %v1246_v56 = vadd.f32 %v1244_v54, %v2834_v0  ;;  %v1247_v57 = vadd.f32 %v1245_v55, %v2836_v5 }
 0x829   : > { %v1248_v39 = vsel %vm822_vm8, %v1246_v56, -inf  ;;  %v1251_v58 = vsel %vm826_vm9, %v1247_v57, -inf }
 0x82a   : > { %1249 = vmax.xlane.f32.xlu1 %v1248_v39 }
 0x82e   : > { %1252 = vmax.xlane.f32.xlu1 %v1251_v58 }
 0x8b7   : > { %v1250_v42 = vpop.xlane.xlu1 %1249 }
 0x8b8   : > { %v1254_v59 = vsub.f32 %v1246_v56, %v1250_v42 }
 0x8ba   : > { %v1256_v60 = vmul.f32 1.442695, %v1254_v59 }
 0x8bb   : > { %v1253_v61 = vpop.xlane.xlu1 %1252 }
 0x8bc   : > { %2507 = vpow2.f32 %v1256_v60  ;;  %v1255_v62 = vsub.f32 %v1247_v57, %v1253_v61  ;;  %v1519_v61 = vld [vmem:[%s3144_s10] sm:$0xff] }
 0x8be   : > { %v1258_v63 = vmul.f32 1.442695, %v1255_v62  ;;  %v1520_v62 = vld [vmem:[%s3144_s10 + $0x8] sm:$0xff] }
 0x8c0   : > { %2509 = vpow2.f32 %v1258_v63  ;;  %v1521_v63 = vld [vmem:[%s3144_s10 + $0x10] sm:$0xff] }
 0x8c6   : > { %v2508_v1 = vpop.eup %2507 }
 0x8c7   : > { %v1260_v3 = vsel %vm822_vm8, %v2508_v1, 0.0 }
 0x8c8   : > { %1261 = vadd.xlane.f32.xlu1 %v1260_v3  ;;  %v1522_v3 = vld [vmem:[%s3144_s10 + $0x18] sm:$0xff] }
 0x8ca   : > { %v2510_v0 = vpop.eup %2509 }
 0x8cb   : > { %v1263_v4 = vsel %vm826_vm9, %v2510_v0, 0.0 }
 0x8cc   : > { %1264 = vadd.xlane.f32.xlu1 %v1263_v4  ;;  %v1523_v4 = vld [vmem:[%s3144_s10 + $0x20] sm:$0xff] }
 0x955   : > { %v1262_v5 = vpop.xlane.xlu1 %1261 }
 0x956   : > { %2511 = vrcp.f32 %v1262_v5  ;;  %v1524_v5 = vld [vmem:[%s3144_s10 + $0x28] sm:$0xff] }
 0x959   : > { %v1265_v6 = vpop.xlane.xlu1 %1264 }
 0x95a   : > { %2513 = vrcp.f32 %v1265_v6  ;;  %v1530_v6 = vpack.c.bf16 %v1524_v5, %v1523_v4 }
 0x960   : > { %v2512_v7 = vpop.eup %2511 }
 0x961   : > { %v1268_v9 = vmul.f32 %v2512_v7, %v2508_v1  ;;  %v1528_v1 = vpack.c.bf16 %v1520_v62, %v1519_v61  ;;  %v1525_v7 = vld [vmem:[%s3144_s10 + $0x30] sm:$0xff]  ;;  %v2049_v62 = vld [vmem:[%s3149_s15] sm:$0x1] }
 0x964   : > { %v2514_v8 = vpop.eup %2513 }
 0x965   : > { %v1269_v10 = vmul.f32 %v2514_v8, %v2510_v0  ;;  %v1529_v0 = vpack.c.bf16 %v1522_v3, %v1521_v63  ;;  %v1526_v8 = vld [vmem:[%s3144_s10 + $0x38] sm:$0xff] }
 0x967   : > { %v1270_v11 = vpack.c.bf16 %v1269_v10, %v1268_v9  ;;  %v1531_v9 = vpack.c.bf16 %v1526_v8, %v1525_v7 }
 0x969   : > { %2353 = vmatmul.mubr.msk.bf16.vlgmr.msra.gmra.mrb[24].mxu0 %vm822_vm8, %v1270_v11 }
 0x96a   : > { %2368 = vmatprep.mubr.msk.f32.mxu0 %vm2590_vm0, %v2589_v2 }
 0xa3c   : > { %v1312_v18 = vpop.f32.mrb[24].mxu0 }
 0xa3d   : > { %v2354_v19 = vpop.f32.mrb[25].mxu0  ;;  %v1313_v21 = vadd.f32 %v1312_v18, %v2869_v45 }
 0xa3e   : > { %v1315_v20 = vpop.f32.mrb[26].mxu0 }
 0xa3f   : > { %v1316_v22 = vadd.f32 %v1315_v20, %v2873_v46  ;;  %v2355_v23 = vpop.f32.mrb[27].mxu0 }
 0xa41   : > { %v1324_v24 = vpack.c.bf16 %v1316_v22, %v1313_v21 }
 0xa43   : > { %2361 = vmatmul.mubr.msk.bf16.vlgmr.msra.gmra.mrb[8].mxu1 %vm614_vm2, %v1324_v24  ;;  %2438 = vmatpush3.bf16.msk.msra.mxu0 %vm2875_vm12, %v1324_v24 }
 0xa44   : > { %2379 = vmatprep.mubr.msk.bf16.mxu1 %vm2590_vm0, %v2589_v2  ;;  %2383 = vmatprep.subr.mxu0 %v2589_v2 }
 0xa45   : > { %2372 = vmatpush3.bf16.msra.mxu1 %v1528_v1 }
 0xa46   : > { %2373 = vmatprep.subr.bf16.mxu1 %v2589_v2 }
 0xa49   : > { %2374 = vmatpush3.bf16.msra.mxu1 %v1529_v0 }
 0xa4a   : > { %2375 = vmatprep.subr.bf16.mxu1 %v2589_v2 }
 0xa4d   : > { %2376 = vmatpush3.bf16.msra.mxu1 %v1530_v6 }
 0xa4e   : > { %2377 = vmatprep.subr.bf16.mxu1 %v2589_v2 }
 0xa51   : > { %2378 = vmatpush3.bf16.msra.mxu1 %v1531_v9 }
 0xa52   : > { %2403 = vmatprep.subr.bf16.mxu1 %v2589_v2 }
 0xb16   : > { %v1372_v26 = vpop.f32.mrb[8].mxu1 }
 0xb17   : > { %v1373_v45 = vadd.f32 %v2214_v25, %v1372_v26  ;;  %v2362_v27 = vpop.f32.mrb[9].mxu1  ;;  %v2025_v26 = vld [vmem:[%s3148_s14 + $0x8] sm:$0xff] }
 0xb18   : > { %v1375_v46 = vpop.f32.mrb[10].mxu1 }
 0xb19   : > { %v1376_v28 = vadd.f32 %v2214_v25, %v1375_v46  ;;  %v2363_v29 = vpop.f32.mrb[11].mxu1  ;;  %v1379_v30 = vsel %vm954_vm13, %v1373_v45, -inf  ;;  %v2024_v25 = vld [vmem:[%s3148_s14] sm:$0xff]  ;;  %v2027_v46 = vld [vmem:[%s3148_s14 + $0x18] sm:$0xff] }
 0xb1a   : > { %v2041_v27 = vpack.c.bf16 %v2025_v26, %v2024_v25  ;;  %v2028_v29 = vld [vmem:[%s3148_s14 + $0x20] sm:$0xff] }
 0xb1b   : > { %v1380_v48 = vsel %vm956_vm14, %v1376_v28, -inf }
 0xb1c   : > { %v1381_v32 = vmax.f32 %v1379_v30, %v1380_v48  ;;  %v2029_v30 = vld [vmem:[%s3148_s14 + $0x28] sm:$0xff] }
 0xb1d   : > { %v2043_v48 = vpack.c.bf16 %v2029_v30, %v2028_v29 }
 0xb1e   : > { %v1382_v33 = vrot.slane %v1381_v32, 4 }
 0xb20   : > { %v1383_v35 = vmax.f32 %v1381_v32, %v1382_v33  ;;  %v2030_v32 = vld [vmem:[%s3148_s14 + $0x30] sm:$0xff]  ;;  %v2031_v33 = vld [vmem:[%s3148_s14 + $0x38] sm:$0xff] }
 0xb22   : > { %v1384_v38 = vrot.slane %v1383_v35, 2 }
 0xb24   : > { %v1385_v40 = vmax.f32 %v1383_v35, %v1384_v38  ;;  %v2044_v35 = vpack.c.bf16 %v2031_v33, %v2030_v32  ;;  %v2032_v38 = vld [vmem:[%s3148_s14 + $0x40] sm:$0xff] }
 0xb26   : > { %v1386_v41 = vrot.slane %v1385_v40, 1 }
 0xb28   : > { %v1387_v43 = vmax.f32 %v1385_v40, %v1386_v41  ;;  %v2033_v40 = vld [vmem:[%s3148_s14 + $0x48] sm:$0xff] }
 0xb29   : > { %v2045_v41 = vpack.c.bf16 %v2033_v40, %v2032_v38 }
 0xb2a   : > { %v1388_v49 = vsub.f32 %v1373_v45, %v1387_v43  ;;  %v1389_v47 = vsub.f32 %v1376_v28, %v1387_v43  ;;  %v2026_v45 = vld [vmem:[%s3148_s14 + $0x10] sm:$0xff] }
 0xb2b   : > { %v2042_v28 = vpack.c.bf16 %v2027_v46, %v2026_v45  ;;  %v2034_v43 = vld [vmem:[%s3148_s14 + $0x50] sm:$0xff] }
 0xb2c   : > { %v1390_v50 = vmul.f32 1.442695, %v1388_v49  ;;  %v1392_v51 = vmul.f32 1.442695, %v1389_v47  ;;  %v2035_v49 = vld [vmem:[%s3148_s14 + $0x58] sm:$0xff] }
 0xb2d   : > { %v2046_v47 = vpack.c.bf16 %v2035_v49, %v2034_v43 }
 0xb2e   : > { %2515 = vpow2.f32 %v1390_v50  ;;  %v1692_v50 = vld [vmem:[%s3146_s12 + $0x8] sm:$0xff] }
 0xb2f   : > { %2517 = vpow2.f32 %v1392_v51 }
 0xb38   : > { %v2516_v31 = vpop.eup %2515 }
 0xb39   : > { %v2518_v34 = vpop.eup %2517  ;;  %v1394_v36 = vsel %vm954_vm13, %v2516_v31, 0.0 }
 0xb3a   : > { %v1395_v37 = vsel %vm956_vm14, %v2518_v34, 0.0 }
 0xb3b   : > { %v1396_v52 = vadd.f32 %v1395_v37, %v1394_v36  ;;  %v1913_v37 = vld [vmem:[%s3146_s12 + $0x18] sm:$0xff] }
 0xb3d   : > { %v1397_v53 = vrot.slane %v1396_v52, 4 }
 0xb3f   : > { %v1398_v54 = vadd.f32 %v1397_v53, %v1396_v52  ;;  %v2036_v53 = vld [vmem:[%s3148_s14 + $0x60] sm:$0xff] }
 0xb41   : > { %v1399_v55 = vrot.slane %v1398_v54, 2 }
 0xb43   : > { %v1400_v56 = vadd.f32 %v1399_v55, %v1398_v54  ;;  %v2037_v54 = vld [vmem:[%s3148_s14 + $0x68] sm:$0xff] }
 0xb44   : > { %v2047_v55 = vpack.c.bf16 %v2037_v54, %v2036_v53 }
 0xb45   : > { %v1401_v39 = vrot.slane %v1400_v56, 1 }
 0xb47   : > { %v1402_v57 = vadd.f32 %v1401_v39, %v1400_v56  ;;  %v2038_v56 = vld [vmem:[%s3148_s14 + $0x70] sm:$0xff]  ;;  %v2039_v39 = vld [vmem:[%s3148_s14 + $0x78] sm:$0xff] }
 0xb49   : > { %2519 = vrcp.f32 %v1402_v57  ;;  %v2048_v57 = vpack.c.bf16 %v2039_v39, %v2038_v56 }
 0xb53   : > { %v2520_v58 = vpop.eup %2519 }
 0xb54   : > { %v1404_v42 = vmul.f32 %v2520_v58, %v2516_v31  ;;  %v1405_v59 = vmul.f32 %v2520_v58, %v2518_v34  ;;  %v1803_v31 = vld [vmem:[%s3146_s12 + $0x10] sm:$0xff]  ;;  %v1584_v58 = vld [vmem:[%s3147_s13] sm:$0x1] }
 0xb56   : > { %1406 = vxpose.xlu1.b32.start [1/2] (short) (narrow) %v1404_v42, 8 }
 0xb5a   : > { %1407 = vxpose.xlu1.b32.end [2/2] (short) (narrow) %v1405_v59, 8 }
 0xbd6   : > { %v1422_v60 = vpop.trf.xlu1 }
 0xbd7   : > { %2369 = vmatmul.mubr.msk.f32.vlgmr.msra.gmra.mrb[22].mxu0 %vm822_vm8, %v1422_v60 }
 0xbd8   : > { %2385 = vmatprep.mubr.msk.f32.mxu0 %vm2590_vm0, %v2589_v2  ;;  %2384 = vmatpush3.msra.mxu0 %v1585_v15 }
 0xbd9   : > { %2388 = vmatprep.subr.mxu0 %v2589_v2 }
 0xcaa   : > { %v1510_v10 = vpop.f32.mrb[22].mxu0 }
 0xcab   : > { %1515 = vrot.lane.b32.xlu0 %v1510_v10, %s2593_s19  ;;  %v2370_v11 = vpop.f32.mrb[23].mxu0  ;;  %s527_s19 = sand.u32 1, %s2579_s22  }
 0xcac   : > { %s528_s26 = scalar_lea.vmem [#allocation2], %s527_s19 }
 0xcad   : > { %s2111_s2 = sshll.u32 %s528_s26, 4  ;;  %s3094_s2 = int_to_ptr.vmem [resolvable:$true] %s2111_s2 }
 0xcae   : > { %s2525_s27 = scalar_lea.vmem %s3094_s2, 16  ;;  %p2532_p0 = scmp.lt.s32.totalorder %s3094_s2, %s2530_s18 }
 0xcaf   : > { %p2526_p11 = scmp.ne.s32.totalorder %s3094_s2, %s2525_s27  ;;  %p2533_p1 = scmp.lt.s32.totalorder %s2531_s1, %s2525_s27 }
 0xcb1   : > { %p2527_p12 = pnand %p2526_p11, %p2721_p5  ;;  %p2534_p2 = por %p2533_p1, %p2532_p0 }
 0xcb3   : > { %p2528_p13 = pneg %p2527_p12 }
 0xcb5   : > { %p2535_p3 = pnand %p2534_p2, %p2528_p13 }
 0xd1d   : > { %v1516_v12 = vpop.permute.xlu0 %1515 }
 0xd1e   : > { %v1518_v13 = vsel %vm614_vm2, %v2922_v44, %v1516_v12 }
 0xd1f   : > { %v1527_v14 = vpack.c.bf16 %v1518_v13, %v1518_v13 }
 0xd21   : > { %2380 = vmatmul.mubr.msk.bf16.vlgmr.msra.gmra.mrb[12].mxu1 %vm1539_vm3, %v1527_v14 }
 0xd22   : > { %2419 = vmatprep.mubr.msk.bf16.mxu1 %vm2590_vm0, %v2589_v2  ;;  %2404 = vmatpush3.bf16.msra.mxu1 %v2041_v27 }
 0xd23   : > { %2405 = vmatprep.subr.bf16.mxu1 %v2589_v2 }
 0xd26   : > { %2406 = vmatpush3.bf16.msra.mxu1 %v2042_v28 }
 0xd27   : > { %2407 = vmatprep.subr.bf16.mxu1 %v2589_v2 }
 0xd2a   : > { %2408 = vmatpush3.bf16.msra.mxu1 %v2043_v48 }
 0xd2b   : > { %2409 = vmatprep.subr.bf16.mxu1 %v2589_v2 }
 0xd2e   : > { %2410 = vmatpush3.bf16.msra.mxu1 %v2044_v35 }
 0xd2f   : > { %2411 = vmatprep.subr.bf16.mxu1 %v2589_v2 }
 0xd32   : > { %2412 = vmatpush3.bf16.msra.mxu1 %v2045_v41 }
 0xd33   : > { %2413 = vmatprep.subr.bf16.mxu1 %v2589_v2 }
 0xd36   : > { %2414 = vmatpush3.bf16.msra.mxu1 %v2046_v47 }
 0xd37   : > { %2415 = vmatprep.subr.bf16.mxu1 %v2589_v2 }
 0xd3a   : > { %2416 = vmatpush3.bf16.msra.mxu1 %v2047_v55 }
 0xd3b   : > { %2417 = vmatprep.subr.bf16.mxu1 %v2589_v2 }
 0xd3e   : > { %2418 = vmatpush3.bf16.msra.mxu1 %v2048_v57 }
 0xdf4   : > { %v1577_v17 = vpop.f32.mrb[12].mxu1 }
 0xdf5   : > { %v1578_v18 = vadd.f32 %v2218_v16, %v1577_v17  ;;  %v2381_v44 = vpop.f32.mrb[13].mxu1 }
 0xdf6   : > { %v1580_v19 = vpop.f32.mrb[14].mxu1 }
 0xdf7   : > { %v1583_v20 = vmax.f32 %v1578_v18, 0.0  ;;  %v2382_v21 = vpop.f32.mrb[15].mxu1 }
 0xdf9   : > { %1804 = vrot.lane.b32.xlu0 %v1583_v20, %s2594_s29  ;;  %1694 = vrot.lane.b32.xlu1 %v1583_v20, %s2595_s30  ;;  %s3092_s30 = scalar_lea.hbm %s3150_s16, %s2225_s20 }
 0xdfd   : > { %1914 = vrot.lane.b32.xlu0 %v1583_v20, %s2596_s23  ;;  %s2099_s23 = scalar_lea.sflag [#allocation3], %s527_s19 }
 0xe1b   : > { %1586 = vxpose.xlu0.b32.start.end [1/1] (short) (narrow) %v1583_v20, 8 }
 0xe6b   : > { %v1805_v22 = vpop.permute.xlu0 %1804  ;;  %v1695_v23 = vpop.permute.xlu1 %1694 }
 0xe6c   : > { %1807 = vxpose.xlu0.b32.start.end [1/1] (short) (narrow) %v1805_v22, 8  ;;  %1697 = vxpose.xlu1.b32.start.end [1/1] (short) (narrow) %v1695_v23, 8 }
 0xe6f   : > { %v1915_v24 = vpop.permute.xlu0 %1914 }
 0xe70   : > { %1917 = vxpose.xlu0.b32.start.end [1/1] (short) (narrow) %v1915_v24, 8 }
 0xe9b   : > { %v1602_v51 = vpop.trf.xlu0 }
 0xe9c   : > { %2386 = vmatmul.mubr.msk.f32.vlgmr.msra.gmra.mrb[28].mxu0 %vm954_vm13, %v1602_v51 }
 0xe9d   : > { %2389 = vmatpush3.msra.mxu0 %v1692_v50  ;;  %2390 = vmatprep.mubr.msk.f32.mxu0 %vm2590_vm0, %v2589_v2 }
 0xe9e   : > { %2393 = vmatprep.subr.mxu0 %v2589_v2 }
 0xeec   : > { %v1713_v34 = vpop.trf.xlu1  ;;  %v1823_v36 = vpop.trf.xlu0 }
 0xeed   : > { %2391 = vmatmul.mubr.msk.f32.vlgmr.msra.gmra.mrb[28].mxu0 %vm954_vm13, %v1713_v34 }
 0xeee   : > { %2394 = vmatpush3.msra.mxu0 %v1803_v31  ;;  %2395 = vmatprep.mubr.msk.f32.mxu0 %vm2590_vm0, %v2589_v2 }
 0xeef   : > { %2398 = vmatprep.subr.mxu0 %v2589_v2 }
 0xef0   : > { %v1933_v52 = vpop.trf.xlu0 }
 0xef5   : > { %2396 = vmatmul.mubr.msk.f32.vlgmr.msra.gmra.mrb[28].mxu0 %vm954_vm13, %v1823_v36 }
 0xef6   : > { %2399 = vmatpush3.msra.mxu0 %v1913_v37  ;;  %2400 = vmatprep.mubr.msk.f32.mxu0 %vm2590_vm0, %v2589_v2  ;;  %vm2096_vm0 = vcmask 8192  }
 0xefd   : > { %2401 = vmatmul.mubr.msk.f32.vlgmr.msra.gmra.mrb[28].mxu0 %vm954_vm13, %v1933_v52 }
 0xfd0   : > { %v2018_v42 = vpop.f32.mrb[28].mxu0 }
 0xfd1   : > { %v2439_v59 = vadd.f32 %v2018_v42, %v1584_v58  ;;  %v2402_v60 = vpop.f32.mrb[29].mxu0 }
 0xfd3   : > { %v2023_v2 = vmax.f32 %v2439_v59, 0.0 }
 0xfd5   : > { %v2040_v61 = vpack.c.bf16 %v2023_v2, %v2023_v2 }
 0xfd7   : > { %2420 = vmatmul.mubr.bf16.vlgmr.msra.gmra.mrb[16].mxu1 %v2040_v61 }
0x10aa   : > { %v2084_v63 = vpop.f32.mrb[16].mxu1 }
0x10ab   : > { %v2085_v1 = vadd.f32 %v2084_v63, %v2049_v62  ;;  %v2421_v3 = vpop.f32.mrb[17].mxu1 }
0x10ac   : > { %v2087_v0 = vpop.f32.mrb[18].mxu1 }
0x10ad   : > { %v2224_v4 = vmul.f32 -1.442695, %v2085_v1  ;;  %v2422_v5 = vpop.f32.mrb[19].mxu1 }
0x10af   : > { %2521 = vpow2.f32 %v2224_v4 }
0x10b9   : > { %v2522_v6 = vpop.eup %2521 }
0x10ba   : > { %v2093_v7 = vadd.f32 1.0, %v2522_v6 }
0x10bc   : > { %2523 = vrcp.f32 %v2093_v7 }
0x10c6   : > { %v2524_v8 = vpop.eup %2523 }
0x10c7   : > { %2097 = vst.msk [vmem:[%s528_s26] sm:$0x1] %vm2096_vm0, %v2524_v8 }
0x10c8   : > { %2538 = shalt.err (!%p2535_p3)
}
0x10c9   : > { %s2539_s19 = scalar_lea.hbm %s3092_s30, 16  ;;  %s2543_s28 = scalar_lea.hbm %s3150_s16, 32 }
0x10ca   : > { %p2540_p4 = scmp.ne.s32.totalorder %s3092_s30, %s2539_s19  ;;  %p2544_p9 = scmp.lt.u32.totalorder %s3092_s30, %s3150_s16 }
0x10cb   : > { %p2545_p10 = scmp.lt.u32.totalorder %s2543_s28, %s2539_s19  ;;  %p2547_p12 = scmp.lt.u32.totalorder %s2539_s19, %s3092_s30 }
0x10cc   : > { %p2541_p7 = pnand %p2540_p4, %p2721_p5 }
0x10cd   : > { %p2546_p11 = por %p2545_p10, %p2544_p9 }
0x10ce   : > { %p2542_p8 = pneg %p2541_p7 }
0x10cf   : > { %p2548_p13 = por %p2547_p12, %p2546_p11 }
0x10d1   : > { %p2549_p0 = pnand %p2548_p13, %p2542_p8 }
0x10d3   : > { %2552 = shalt.err (!%p2549_p0)
}
0x10d4   : > { %2446 = dma.vmem_to_hbm [thread:$0]  (%p2721_p5), %s3094_s2, 16, %s3092_s30, %s2099_s23  }
0x10d5 PF: > { %p2452_p1 = scmp.ge.s32.totalorder %s2587_s24, 2  ;;  %s2123_s1 = sand.u32 1, %s2575_s21  }
0x10d6   : > { %s2124_s27 = scalar_lea.sflag [#allocation3], %s2123_s1 }
0x10d7   : > { %p2449_p2 = pnand %p2452_p1, %p2725_p6 }
0x10d9   : > { %2570 = dma.done.wait (!%p2449_p2), %s2124_s27, 16  }
0x10da   : > { %2572 = vsyncadd (!%p2449_p2), %s2124_s27, 4294967280  ;;  %s3169_s24 = sld [smem:[#allocation6_spill]]  ;;  %s3170_s18 = sld [smem:[#allocation5_spill]] }
0x10db   : > { %s3171_s23 = sld [smem:[#allocation7_spill]]  ;;  %s3172_s21 = smov %s2579_s22 }
0x10e0   : > { %p26_p3 = scmp.ge.s32.totalorder %s3169_s24, 4   ;;  %s3173_s22 = smov %s3170_s18 }
0x10e2   :  { %28 = sbr.rel (!%p26_p3) target bundleno = 7 (0x7), region = 126 }
0x10e9   :  { %2128 = vsyncpa [#allocation3], 1 }
0x10ea   :  { %2130 = vsyncpa [#allocation3 + $0x1], 1 }

</bundles_post_ra>
